<compile_context>
chip_gen: v5e
topology: v5e:2x2
jax: 0.10.0
libtpu: 0.0.40
codegen_flags: <defaults>
</compile_context>

<pallas_src>
import jax
import jax.numpy as jnp
from jax import lax
from jax.experimental import pallas as pl
from jax.experimental.pallas import tpu as pltpu
from math import sqrt, pi

SQRT_1_4PI = sqrt(1.0 / (4.0 * pi))
SQRT_3_4PI = sqrt(3.0 / (4.0 * pi))
INV_SQRT2 = 1.0 / sqrt(2.0)


def _round_up(x, m):
    return ((x + m - 1) // m) * m


def _cg_coeffs(l):
    """Closed-form <l-1,m1;1,m2|l,m> CG coefficients (cormorant rescaling folded in)."""
    # sqrt(4*pi*(2l+1)/(3*(2l-1))) / <l-1,0;1,0|l,0>  ==  sqrt(4*pi*(2l+1)/(3*l))
    scale = sqrt(4.0 * pi * (2 * l + 1) / (3.0 * l))
    coeffs = []
    for m in range(-l, l + 1):
        cp = sqrt(max((l + m - 1) * (l + m), 0) / ((2 * l - 1) * (2 * l)))  # m2 = +1
        c0 = sqrt(max((l - m) * (l + m), 0) / ((2 * l - 1) * l))            # m2 =  0
        cm = sqrt(max((l - m - 1) * (l - m), 0) / ((2 * l - 1) * (2 * l)))  # m2 = -1
        coeffs.append((scale * cp, scale * c0, scale * cm))
    return coeffs


def _unit_scale(max_sh, sh_norm):
    if sh_norm == 'qm':
        return [1.0] * (max_sh + 1)
    elif sh_norm == 'unit':
        return [sqrt(4.0 * pi / (2 * l + 1)) for l in range(max_sh + 1)]
    raise ValueError('Incorrect choice of spherical harmonic normalization!')


def _make_kernel(max_sh, unit_scale):
    """Kernel over one (TI, TJ) tile of the pair grid, streaming per-l stores."""

    def kernel(x1_ref, y1_ref, z1_ref, x2_ref, y2_ref, z2_ref, harm_ref, norm_ref):
        x1, y1, z1 = x1_ref[0], y1_ref[0], z1_ref[0]   # (TI, 1) pos1 coords
        x2, y2, z2 = x2_ref[0], y2_ref[0], z2_ref[0]   # (1, TJ) pos2 coords
        # pairwise relative position (pos1[i] - pos2[j]) via broadcast
        dx, dy, dz = x1 - x2, y1 - y2, z1 - z2          # (TI, TJ)
        d2 = dx * dx + dy * dy + dz * dz
        norm_ref[0, :, :] = jnp.sqrt(d2)
        # single EUP rsqrt instead of sqrt + divide; zero vector -> zero unit vec
        inv_r = jnp.where(d2 > 0.0, lax.rsqrt(d2), 0.0)
        ux, uy, uz = dx * inv_r, dy * inv_r, dz * inv_r
        zero = jnp.zeros_like(ux)

        def store(l, mi, re, im):
            s = unit_scale[l]
            if s != 1.0:                 # skipped on the default 'qm' path
                re, im = s * re, s * im
            base = 2 * l * l + 2 * mi
            harm_ref[0, base, :, :] = re
            harm_ref[0, base + 1, :, :] = im

        # l = 0 (constant plane, NOT masked at r==0, matching the PyTorch module)
        store(0, 0, jnp.full_like(ux, SQRT_1_4PI), zero)

        if max_sh >= 1:
            c = SQRT_3_4PI
            psi1 = [
                (c * INV_SQRT2 * ux, -c * INV_SQRT2 * uy),    # m = -1
                (c * uz, zero),                               # m =  0
                (-c * INV_SQRT2 * ux, -c * INV_SQRT2 * uy),   # m = +1
            ]
            for mi, (re, im) in enumerate(psi1):
                store(1, mi, re, im)

            prev = psi1
            for l in range(2, max_sh + 1):
                coeffs = _cg_coeffs(l)
                cur = []
                for mi, m in enumerate(range(-l, l + 1)):
                    cp, c0, cm = coeffs[mi]
                    acc_re, acc_im = zero, zero
                    for coef, m1, (p_re, p_im) in (
                        (cp, m - 1, psi1[2]),   # pair with Y_1^{+1}
                        (c0, m,     psi1[1]),   # pair with Y_1^{0}
                        (cm, m + 1, psi1[0]),   # pair with Y_1^{-1}
                    ):
                        if coef == 0.0 or abs(m1) > l - 1:
                            continue
                        a, b = prev[m1 + (l - 1)]
                        acc_re = acc_re + coef * (a * p_re - b * p_im)   # complex multiply
                        acc_im = acc_im + coef * (a * p_im + b * p_re)
                    # stream the store so only `prev` stays live for the recursion
                    store(l, mi, acc_re, acc_im)
                    cur.append((acc_re, acc_im))
                prev = cur

    return kernel


def spherical_harmonics_rel_pallas(pos1, pos2, max_sh, sh_norm='qm',
                                   tile_i=256, tile_j=256, channel_major=False):
    """pos1: (B, N1, 3), pos2: (B, N2, 3) float32.

    Default return (matching PyTorch SphericalHarmonicsRel.forward):
        ([per-l (B, N1, N2, 1, 2l+1, 2)], (B, N1, N2))
    With channel_major=True returns the canonical (B, C, N1, N2) slab
    (C = 2*(max_sh+1)^2) plus norms, skipping the wrapper-side transpose --
    preferred for a fused downstream consumer (it avoids one extra full
    HBM read + write of the output).
    """
    B, N1, _ = pos1.shape
    B2, N2, _ = pos2.shape
    assert B == B2
    C = 2 * (max_sh + 1) ** 2
    unit_scale = _unit_scale(max_sh, sh_norm)

    # lane-aligned tiling of the pair grid: TI mult of 8 (sublanes), TJ mult of
    # 128 (lanes); clamp tiles to the (padded) problem size so small inputs
    # don't over-pad.
    ti = _round_up(min(tile_i, _round_up(N1, 8)), 8)
    tj = _round_up(min(tile_j, _round_up(N2, 128)), 128)
    n1p = _round_up(N1, ti)
    n2p = _round_up(N2, tj)

    p1 = pos1 if n1p == N1 else jnp.pad(pos1, ((0, 0), (0, n1p - N1), (0, 0)))
    p2 = pos2 if n2p == N2 else jnp.pad(pos2, ((0, 0), (0, n2p - N2), (0, 0)))

    # glue: split coordinates so the kernel forms (TI,1) - (1,TJ) by broadcast
    x1, y1, z1 = (p1[:, :, k][:, :, None] for k in range(3))   # (B, n1p, 1)
    x2, y2, z2 = (p2[:, :, k][:, None, :] for k in range(3))   # (B, 1, n2p)

    kernel = _make_kernel(max_sh, unit_scale)
    grid = (B, n1p // ti, n2p // tj)
    harm, norms = pl.pallas_call(
        kernel,
        out_shape=(jax.ShapeDtypeStruct((B, C, n1p, n2p), pos1.dtype),
                   jax.ShapeDtypeStruct((B, n1p, n2p), pos1.dtype)),
        grid=grid,
        in_specs=[pl.BlockSpec((1, ti, 1), lambda b, i, j: (b, i, 0)),
                  pl.BlockSpec((1, ti, 1), lambda b, i, j: (b, i, 0)),
                  pl.BlockSpec((1, ti, 1), lambda b, i, j: (b, i, 0)),
                  pl.BlockSpec((1, 1, tj), lambda b, i, j: (b, 0, j)),
                  pl.BlockSpec((1, 1, tj), lambda b, i, j: (b, 0, j)),
                  pl.BlockSpec((1, 1, tj), lambda b, i, j: (b, 0, j))],
        out_specs=(pl.BlockSpec((1, C, ti, tj), lambda b, i, j: (b, 0, i, j)),
                   pl.BlockSpec((1, ti, tj), lambda b, i, j: (b, i, j))),
        compiler_params=pltpu.CompilerParams(
            dimension_semantics=("parallel", "parallel", "parallel"),
            vmem_limit_bytes=48 * 1024 * 1024),
    )(x1, y1, z1, x2, y2, z2)

    harm = harm[:, :, :N1, :N2]
    norms = norms[:, :N1, :N2]
    if channel_major:
        return harm, norms

    # glue: convert back to the PyTorch layout (B, N1, N2, 1, 2l+1, 2) per l.
    # NOTE: this per-l reshape+transpose is a second full pass over the output
    # in HBM; downstream fused consumers should use channel_major=True instead.
    sph_harms = []
    for l in range(max_sh + 1):
        sl = harm[:, 2 * l * l: 2 * (l + 1) * (l + 1)]         # (B, 2(2l+1), N1, N2)
        sl = sl.reshape(B, 2 * l + 1, 2, N1, N2)
        sl = jnp.transpose(sl, (0, 3, 4, 1, 2))                # (B, N1, N2, 2l+1, 2)
        sph_harms.append(sl[:, :, :, None, :, :])              # add channel dim of 1
    return sph_harms, norms


# ----------------------------------------------------------------------------
# Pure-JAX reference (same math, unpadded / untiled) for validating the Pallas
# plumbing: tiling, padding, streaming stores, layout conversion.
# ----------------------------------------------------------------------------
def _sph_planes(ux, uy, uz, max_sh):
    zero = jnp.zeros_like(ux)
    out = [[(jnp.full_like(ux, SQRT_1_4PI), zero)]]          # l = 0 (constant)
    if max_sh < 1:
        return out
    c = SQRT_3_4PI
    psi1 = [
        (c * INV_SQRT2 * ux, -c * INV_SQRT2 * uy),            # m = -1
        (c * uz, zero),                                       # m =  0
        (-c * INV_SQRT2 * ux, -c * INV_SQRT2 * uy),           # m = +1
    ]
    out.append(psi1)
    prev = psi1
    for l in range(2, max_sh + 1):
        coeffs = _cg_coeffs(l)
        cur = []
        for idx, m in enumerate(range(-l, l + 1)):
            cp, c0, cm = coeffs[idx]
            acc_re, acc_im = zero, zero
            for coef, m1, (p_re, p_im) in (
                (cp, m - 1, psi1[2]),
                (c0, m,     psi1[1]),
                (cm, m + 1, psi1[0]),
            ):
                if coef == 0.0 or abs(m1) > l - 1:
                    continue
                a, b = prev[m1 + (l - 1)]
                acc_re = acc_re + coef * (a * p_re - b * p_im)
                acc_im = acc_im + coef * (a * p_im + b * p_re)
            cur.append((acc_re, acc_im))
        out.append(cur)
        prev = cur
    return out


def spherical_harmonics_rel_reference(pos1, pos2, max_sh, sh_norm='qm'):
    rel = pos1[:, :, None, :] - pos2[:, None, :, :]
    r = jnp.sqrt(jnp.sum(rel * rel, axis=-1))
    nz = r > 0.0
    inv_r = jnp.where(nz, 1.0 / jnp.where(nz, r, 1.0), 0.0)
    ux, uy, uz = rel[..., 0] * inv_r, rel[..., 1] * inv_r, rel[..., 2] * inv_r
    unit_scale = _unit_scale(max_sh, sh_norm)
    planes = _sph_planes(ux, uy, uz, max_sh)
    sph = []
    for l, planes_l in enumerate(planes):
        s = unit_scale[l]
        part = jnp.stack([jnp.stack([s * re, s * im], axis=-1) for re, im in planes_l],
                         axis=-2)                              # (B, N1, N2, 2l+1, 2)
        sph.append(part[:, :, :, None, :, :])
    return sph, r


if __name__ == "__main__":
    key = jax.random.PRNGKey(0)
    k1, k2, k3, k4 = jax.random.split(key, 4)

    # --- test 1: small square problem, default 'qm' normalization ---
    B, N, max_sh = 2, 8, 3
    pos1 = jax.random.normal(k1, (B, N, 3), dtype=jnp.float32)
    pos2 = jax.random.normal(k2, (B, N, 3), dtype=jnp.float32)

    sph, norms = spherical_harmonics_rel_pallas(pos1, pos2, max_sh, sh_norm='qm')
    norms = jax.block_until_ready(norms)
    sph = [jax.block_until_ready(p) for p in sph]

    ref_sph, ref_norms = spherical_harmonics_rel_reference(pos1, pos2, max_sh, sh_norm='qm')
    assert norms.shape == (B, N, N)
    assert bool(jnp.allclose(norms, ref_norms, atol=1e-4, rtol=1e-4))
    for l in range(max_sh + 1):
        assert sph[l].shape == (B, N, N, 1, 2 * l + 1, 2)
        assert bool(jnp.allclose(sph[l], ref_sph[l], atol=1e-4, rtol=1e-4))

    # --- test 2: non-aligned N1 != N2 (exercises the padding path), 'unit' norm ---
    B2, Na, Nb, max_sh2 = 1, 12, 9, 2
    pos1b = jax.random.normal(k3, (B2, Na, 3), dtype=jnp.float32)
    pos2b = jax.random.normal(k4, (B2, Nb, 3), dtype=jnp.float32)

    sph2, norms2 = spherical_harmonics_rel_pallas(pos1b, pos2b, max_sh2, sh_norm='unit')
    norms2 = jax.block_until_ready(norms2)
    sph2 = [jax.block_until_ready(p) for p in sph2]

    ref_sph2, ref_norms2 = spherical_harmonics_rel_reference(pos1b, pos2b, max_sh2,
                                                             sh_norm='unit')
    assert norms2.shape == (B2, Na, Nb)
    assert bool(jnp.allclose(norms2, ref_norms2, atol=1e-4, rtol=1e-4))
    for l in range(max_sh2 + 1):
        assert sph2[l].shape == (B2, Na, Nb, 1, 2 * l + 1, 2)
        assert bool(jnp.allclose(sph2[l], ref_sph2[l], atol=1e-4, rtol=1e-4))

    print("KERNEL_OK")
</pallas_src>

<mosaic_0001>
module attributes {stable_mosaic.version = 11 : i64} {
  func.func @kernel(%arg0: i32, %arg1: i32, %arg2: i32, %arg3: memref<1x8x1xf32, #tpu.memory_space<vmem>>, %arg4: memref<1x8x1xf32, #tpu.memory_space<vmem>>, %arg5: memref<1x8x1xf32, #tpu.memory_space<vmem>>, %arg6: memref<1x1x128xf32, #tpu.memory_space<vmem>>, %arg7: memref<1x1x128xf32, #tpu.memory_space<vmem>>, %arg8: memref<1x1x128xf32, #tpu.memory_space<vmem>>, %arg9: memref<1x32x8x128xf32, #tpu.memory_space<vmem>>, %arg10: memref<1x8x128xf32, #tpu.memory_space<vmem>>) attributes {dimension_semantics = [#tpu.dimension_semantics<parallel>, #tpu.dimension_semantics<parallel>, #tpu.dimension_semantics<parallel>], iteration_bounds = array<i64: 2, 1, 1>, scalar_prefetch = 0 : i64, scratch_operands = 0 : i64, tpu.core_type = #tpu.core_type<tc>, window_params = [{transform_indices = @transform_0, window_bounds = array<i64: 1, 8, 1>}, {transform_indices = @transform_1, window_bounds = array<i64: 1, 8, 1>}, {transform_indices = @transform_2, window_bounds = array<i64: 1, 8, 1>}, {transform_indices = @transform_3, window_bounds = array<i64: 1, 1, 128>}, {transform_indices = @transform_4, window_bounds = array<i64: 1, 1, 128>}, {transform_indices = @transform_5, window_bounds = array<i64: 1, 1, 128>}, {transform_indices = @transform_6, window_bounds = array<i64: 1, 32, 8, 128>}, {transform_indices = @transform_7, window_bounds = array<i64: 1, 8, 128>}]} {
    %c0 = arith.constant 0 : index
    %c0_0 = arith.constant 0 : index
    %c0_1 = arith.constant 0 : index
    %0 = vector.load %arg3[%c0, %c0_0, %c0_1] : memref<1x8x1xf32, #tpu.memory_space<vmem>>, vector<1x8x1xf32>
    %1 = vector.shape_cast %0 : vector<1x8x1xf32> to vector<8x1xf32>
    %c0_2 = arith.constant 0 : index
    %c0_3 = arith.constant 0 : index
    %c0_4 = arith.constant 0 : index
    %2 = vector.load %arg4[%c0_2, %c0_3, %c0_4] : memref<1x8x1xf32, #tpu.memory_space<vmem>>, vector<1x8x1xf32>
    %3 = vector.shape_cast %2 : vector<1x8x1xf32> to vector<8x1xf32>
    %c0_5 = arith.constant 0 : index
    %c0_6 = arith.constant 0 : index
    %c0_7 = arith.constant 0 : index
    %4 = vector.load %arg5[%c0_5, %c0_6, %c0_7] : memref<1x8x1xf32, #tpu.memory_space<vmem>>, vector<1x8x1xf32>
    %5 = vector.shape_cast %4 : vector<1x8x1xf32> to vector<8x1xf32>
    %c0_8 = arith.constant 0 : index
    %c0_9 = arith.constant 0 : index
    %c0_10 = arith.constant 0 : index
    %6 = vector.load %arg6[%c0_8, %c0_9, %c0_10] : memref<1x1x128xf32, #tpu.memory_space<vmem>>, vector<1x1x128xf32>
    %7 = vector.shape_cast %6 : vector<1x1x128xf32> to vector<1x128xf32>
    %c0_11 = arith.constant 0 : index
    %c0_12 = arith.constant 0 : index
    %c0_13 = arith.constant 0 : index
    %8 = vector.load %arg7[%c0_11, %c0_12, %c0_13] : memref<1x1x128xf32, #tpu.memory_space<vmem>>, vector<1x1x128xf32>
    %9 = vector.shape_cast %8 : vector<1x1x128xf32> to vector<1x128xf32>
    %c0_14 = arith.constant 0 : index
    %c0_15 = arith.constant 0 : index
    %c0_16 = arith.constant 0 : index
    %10 = vector.load %arg8[%c0_14, %c0_15, %c0_16] : memref<1x1x128xf32, #tpu.memory_space<vmem>>, vector<1x1x128xf32>
    %11 = vector.shape_cast %10 : vector<1x1x128xf32> to vector<1x128xf32>
    %12 = vector.broadcast %1 : vector<8x1xf32> to vector<8x128xf32>
    %13 = vector.broadcast %7 : vector<1x128xf32> to vector<8x128xf32>
    %14 = arith.subf %12, %13 : vector<8x128xf32>
    %15 = vector.broadcast %3 : vector<8x1xf32> to vector<8x128xf32>
    %16 = vector.broadcast %9 : vector<1x128xf32> to vector<8x128xf32>
    %17 = arith.subf %15, %16 : vector<8x128xf32>
    %18 = vector.broadcast %5 : vector<8x1xf32> to vector<8x128xf32>
    %19 = vector.broadcast %11 : vector<1x128xf32> to vector<8x128xf32>
    %20 = arith.subf %18, %19 : vector<8x128xf32>
    %21 = arith.mulf %14, %14 : vector<8x128xf32>
    %22 = arith.mulf %17, %17 : vector<8x128xf32>
    %23 = arith.addf %21, %22 : vector<8x128xf32>
    %24 = arith.mulf %20, %20 : vector<8x128xf32>
    %25 = arith.addf %23, %24 : vector<8x128xf32>
    %26 = math.sqrt %25 : vector<8x128xf32>
    %c0_17 = arith.constant 0 : index
    %c0_18 = arith.constant 0 : index
    %c0_19 = arith.constant 0 : index
    %27 = vector.load %arg10[%c0_17, %c0_18, %c0_19] : memref<1x8x128xf32, #tpu.memory_space<vmem>>, vector<1x8x128xf32>
    %28 = vector.shape_cast %27 : vector<1x8x128xf32> to vector<8x128xf32>
    %29 = vector.shape_cast %26 : vector<8x128xf32> to vector<1x8x128xf32>
    tpu.vector_store %arg10[%c0_17, %c0_18, %c0_19], %29 {strides = array<i32>} : memref<1x8x128xf32, #tpu.memory_space<vmem>>, vector<1x8x128xf32>,
    %cst = arith.constant 0.000000e+00 : f32
    %30 = vector.broadcast %cst : f32 to vector<8x128xf32>
    %31 = arith.cmpf ogt, %25, %30 : vector<8x128xf32>
    %32 = math.rsqrt %25 : vector<8x128xf32>
    %cst_20 = arith.constant 0.000000e+00 : f32
    %33 = vector.broadcast %cst_20 : f32 to vector<8x128xf32>
    %34 = arith.select %31, %32, %33 : vector<8x128xi1>, vector<8x128xf32>
    %35 = arith.mulf %14, %34 : vector<8x128xf32>
    %36 = arith.mulf %17, %34 : vector<8x128xf32>
    %37 = arith.mulf %20, %34 : vector<8x128xf32>
    %cst_21 = arith.constant 0.000000e+00 : f32
    %38 = vector.broadcast %cst_21 : f32 to vector<8x128xf32>
    %cst_22 = arith.constant 0.282094806 : f32
    %39 = vector.broadcast %cst_22 : f32 to vector<8x128xf32>
    %c0_23 = arith.constant 0 : index
    %c0_24 = arith.constant 0 : index
    %c0_25 = arith.constant 0 : index
    %c0_26 = arith.constant 0 : index
    %40 = vector.load %arg9[%c0_23, %c0_24, %c0_25, %c0_26] : memref<1x32x8x128xf32, #tpu.memory_space<vmem>>, vector<1x1x8x128xf32>
    %41 = vector.shape_cast %40 : vector<1x1x8x128xf32> to vector<8x128xf32>
    %42 = vector.shape_cast %39 : vector<8x128xf32> to vector<1x1x8x128xf32>
    tpu.vector_store %arg9[%c0_23, %c0_24, %c0_25, %c0_26], %42 {strides = array<i32>} : memref<1x32x8x128xf32, #tpu.memory_space<vmem>>, vector<1x1x8x128xf32>,
    %c0_27 = arith.constant 0 : index
    %c1 = arith.constant 1 : index
    %c0_28 = arith.constant 0 : index
    %c0_29 = arith.constant 0 : index
    %43 = vector.load %arg9[%c0_27, %c1, %c0_28, %c0_29] : memref<1x32x8x128xf32, #tpu.memory_space<vmem>>, vector<1x1x8x128xf32>
    %44 = vector.shape_cast %43 : vector<1x1x8x128xf32> to vector<8x128xf32>
    %45 = vector.shape_cast %38 : vector<8x128xf32> to vector<1x1x8x128xf32>
    tpu.vector_store %arg9[%c0_27, %c1, %c0_28, %c0_29], %45 {strides = array<i32>} : memref<1x32x8x128xf32, #tpu.memory_space<vmem>>, vector<1x1x8x128xf32>,
    %cst_30 = arith.constant 0.345494151 : f32
    %46 = vector.broadcast %cst_30 : f32 to vector<8x128xf32>
    %47 = arith.mulf %46, %35 : vector<8x128xf32>
    %cst_31 = arith.constant -0.345494151 : f32
    %48 = vector.broadcast %cst_31 : f32 to vector<8x128xf32>
    %49 = arith.mulf %48, %36 : vector<8x128xf32>
    %cst_32 = arith.constant 0.488602519 : f32
    %50 = vector.broadcast %cst_32 : f32 to vector<8x128xf32>
    %51 = arith.mulf %50, %37 : vector<8x128xf32>
    %cst_33 = arith.constant -0.345494151 : f32
    %52 = vector.broadcast %cst_33 : f32 to vector<8x128xf32>
    %53 = arith.mulf %52, %35 : vector<8x128xf32>
    %cst_34 = arith.constant -0.345494151 : f32
    %54 = vector.broadcast %cst_34 : f32 to vector<8x128xf32>
    %55 = arith.mulf %54, %36 : vector<8x128xf32>
    %c0_35 = arith.constant 0 : index
    %c2 = arith.constant 2 : index
    %c0_36 = arith.constant 0 : index
    %c0_37 = arith.constant 0 : index
    %56 = vector.load %arg9[%c0_35, %c2, %c0_36, %c0_37] : memref<1x32x8x128xf32, #tpu.memory_space<vmem>>, vector<1x1x8x128xf32>
    %57 = vector.shape_cast %56 : vector<1x1x8x128xf32> to vector<8x128xf32>
    %58 = vector.shape_cast %47 : vector<8x128xf32> to vector<1x1x8x128xf32>
    tpu.vector_store %arg9[%c0_35, %c2, %c0_36, %c0_37], %58 {strides = array<i32>} : memref<1x32x8x128xf32, #tpu.memory_space<vmem>>, vector<1x1x8x128xf32>,
    %c0_38 = arith.constant 0 : index
    %c3 = arith.constant 3 : index
    %c0_39 = arith.constant 0 : index
    %c0_40 = arith.constant 0 : index
    %59 = vector.load %arg9[%c0_38, %c3, %c0_39, %c0_40] : memref<1x32x8x128xf32, #tpu.memory_space<vmem>>, vector<1x1x8x128xf32>
    %60 = vector.shape_cast %59 : vector<1x1x8x128xf32> to vector<8x128xf32>
    %61 = vector.shape_cast %49 : vector<8x128xf32> to vector<1x1x8x128xf32>
    tpu.vector_store %arg9[%c0_38, %c3, %c0_39, %c0_40], %61 {strides = array<i32>} : memref<1x32x8x128xf32, #tpu.memory_space<vmem>>, vector<1x1x8x128xf32>,
    %c0_41 = arith.constant 0 : index
    %c4 = arith.constant 4 : index
    %c0_42 = arith.constant 0 : index
    %c0_43 = arith.constant 0 : index
    %62 = vector.load %arg9[%c0_41, %c4, %c0_42, %c0_43] : memref<1x32x8x128xf32, #tpu.memory_space<vmem>>, vector<1x1x8x128xf32>
    %63 = vector.shape_cast %62 : vector<1x1x8x128xf32> to vector<8x128xf32>
    %64 = vector.shape_cast %51 : vector<8x128xf32> to vector<1x1x8x128xf32>
    tpu.vector_store %arg9[%c0_41, %c4, %c0_42, %c0_43], %64 {strides = array<i32>} : memref<1x32x8x128xf32, #tpu.memory_space<vmem>>, vector<1x1x8x128xf32>,
    %c0_44 = arith.constant 0 : index
    %c5 = arith.constant 5 : index
    %c0_45 = arith.constant 0 : index
    %c0_46 = arith.constant 0 : index
    %65 = vector.load %arg9[%c0_44, %c5, %c0_45, %c0_46] : memref<1x32x8x128xf32, #tpu.memory_space<vmem>>, vector<1x1x8x128xf32>
    %66 = vector.shape_cast %65 : vector<1x1x8x128xf32> to vector<8x128xf32>
    %67 = vector.shape_cast %38 : vector<8x128xf32> to vector<1x1x8x128xf32>
    tpu.vector_store %arg9[%c0_44, %c5, %c0_45, %c0_46], %67 {strides = array<i32>} : memref<1x32x8x128xf32, #tpu.memory_space<vmem>>, vector<1x1x8x128xf32>,
    %c0_47 = arith.constant 0 : index
    %c6 = arith.constant 6 : index
    %c0_48 = arith.constant 0 : index
    %c0_49 = arith.constant 0 : index
    %68 = vector.load %arg9[%c0_47, %c6, %c0_48, %c0_49] : memref<1x32x8x128xf32, #tpu.memory_space<vmem>>, vector<1x1x8x128xf32>
    %69 = vector.shape_cast %68 : vector<1x1x8x128xf32> to vector<8x128xf32>
    %70 = vector.shape_cast %53 : vector<8x128xf32> to vector<1x1x8x128xf32>
    tpu.vector_store %arg9[%c0_47, %c6, %c0_48, %c0_49], %70 {strides = array<i32>} : memref<1x32x8x128xf32, #tpu.memory_space<vmem>>, vector<1x1x8x128xf32>,
    %c0_50 = arith.constant 0 : index
    %c7 = arith.constant 7 : index
    %c0_51 = arith.constant 0 : index
    %c0_52 = arith.constant 0 : index
    %71 = vector.load %arg9[%c0_50, %c7, %c0_51, %c0_52] : memref<1x32x8x128xf32, #tpu.memory_space<vmem>>, vector<1x1x8x128xf32>
    %72 = vector.shape_cast %71 : vector<1x1x8x128xf32> to vector<8x128xf32>
    %73 = vector.shape_cast %55 : vector<8x128xf32> to vector<1x1x8x128xf32>
    tpu.vector_store %arg9[%c0_50, %c7, %c0_51, %c0_52], %73 {strides = array<i32>} : memref<1x32x8x128xf32, #tpu.memory_space<vmem>>, vector<1x1x8x128xf32>,
    %74 = arith.mulf %47, %47 : vector<8x128xf32>
    %75 = arith.mulf %49, %49 : vector<8x128xf32>
    %76 = arith.subf %74, %75 : vector<8x128xf32>
    %cst_53 = arith.constant 3.23604321 : f32
    %77 = vector.broadcast %cst_53 : f32 to vector<8x128xf32>
    %78 = arith.mulf %77, %76 : vector<8x128xf32>
    %79 = arith.addf %38, %78 : vector<8x128xf32>
    %80 = arith.mulf %47, %49 : vector<8x128xf32>
    %81 = arith.mulf %49, %47 : vector<8x128xf32>
    %82 = arith.addf %80, %81 : vector<8x128xf32>
    %cst_54 = arith.constant 3.23604321 : f32
    %83 = vector.broadcast %cst_54 : f32 to vector<8x128xf32>
    %84 = arith.mulf %83, %82 : vector<8x128xf32>
    %85 = arith.addf %38, %84 : vector<8x128xf32>
    %c0_55 = arith.constant 0 : index
    %c8 = arith.constant 8 : index
    %c0_56 = arith.constant 0 : index
    %c0_57 = arith.constant 0 : index
    %86 = vector.load %arg9[%c0_55, %c8, %c0_56, %c0_57] : memref<1x32x8x128xf32, #tpu.memory_space<vmem>>, vector<1x1x8x128xf32>
    %87 = vector.shape_cast %86 : vector<1x1x8x128xf32> to vector<8x128xf32>
    %88 = vector.shape_cast %79 : vector<8x128xf32> to vector<1x1x8x128xf32>
    tpu.vector_store %arg9[%c0_55, %c8, %c0_56, %c0_57], %88 {strides = array<i32>} : memref<1x32x8x128xf32, #tpu.memory_space<vmem>>, vector<1x1x8x128xf32>,
    %c0_58 = arith.constant 0 : index
    %c9 = arith.constant 9 : index
    %c0_59 = arith.constant 0 : index
    %c0_60 = arith.constant 0 : index
    %89 = vector.load %arg9[%c0_58, %c9, %c0_59, %c0_60] : memref<1x32x8x128xf32, #tpu.memory_space<vmem>>, vector<1x1x8x128xf32>
    %90 = vector.shape_cast %89 : vector<1x1x8x128xf32> to vector<8x128xf32>
    %91 = vector.shape_cast %85 : vector<8x128xf32> to vector<1x1x8x128xf32>
    tpu.vector_store %arg9[%c0_58, %c9, %c0_59, %c0_60], %91 {strides = array<i32>} : memref<1x32x8x128xf32, #tpu.memory_space<vmem>>, vector<1x1x8x128xf32>,
    %92 = arith.mulf %47, %51 : vector<8x128xf32>
    %93 = arith.mulf %49, %38 : vector<8x128xf32>
    %94 = arith.subf %92, %93 : vector<8x128xf32>
    %cst_61 = arith.constant 2.28822803 : f32
    %95 = vector.broadcast %cst_61 : f32 to vector<8x128xf32>
    %96 = arith.mulf %95, %94 : vector<8x128xf32>
    %97 = arith.addf %38, %96 : vector<8x128xf32>
    %98 = arith.mulf %47, %38 : vector<8x128xf32>
    %99 = arith.mulf %49, %51 : vector<8x128xf32>
    %100 = arith.addf %98, %99 : vector<8x128xf32>
    %cst_62 = arith.constant 2.28822803 : f32
    %101 = vector.broadcast %cst_62 : f32 to vector<8x128xf32>
    %102 = arith.mulf %101, %100 : vector<8x128xf32>
    %103 = arith.addf %38, %102 : vector<8x128xf32>
    %104 = arith.mulf %51, %47 : vector<8x128xf32>
    %105 = arith.mulf %38, %49 : vector<8x128xf32>
    %106 = arith.subf %104, %105 : vector<8x128xf32>
    %cst_63 = arith.constant 2.28822803 : f32
    %107 = vector.broadcast %cst_63 : f32 to vector<8x128xf32>
    %108 = arith.mulf %107, %106 : vector<8x128xf32>
    %109 = arith.addf %97, %108 : vector<8x128xf32>
    %110 = arith.mulf %51, %49 : vector<8x128xf32>
    %111 = arith.mulf %38, %47 : vector<8x128xf32>
    %112 = arith.addf %110, %111 : vector<8x128xf32>
    %cst_64 = arith.constant 2.28822803 : f32
    %113 = vector.broadcast %cst_64 : f32 to vector<8x128xf32>
    %114 = arith.mulf %113, %112 : vector<8x128xf32>
    %115 = arith.addf %103, %114 : vector<8x128xf32>
    %c0_65 = arith.constant 0 : index
    %c10 = arith.constant 10 : index
    %c0_66 = arith.constant 0 : index
    %c0_67 = arith.constant 0 : index
    %116 = vector.load %arg9[%c0_65, %c10, %c0_66, %c0_67] : memref<1x32x8x128xf32, #tpu.memory_space<vmem>>, vector<1x1x8x128xf32>
    %117 = vector.shape_cast %116 : vector<1x1x8x128xf32> to vector<8x128xf32>
    %118 = vector.shape_cast %109 : vector<8x128xf32> to vector<1x1x8x128xf32>
    tpu.vector_store %arg9[%c0_65, %c10, %c0_66, %c0_67], %118 {strides = array<i32>} : memref<1x32x8x128xf32, #tpu.memory_space<vmem>>, vector<1x1x8x128xf32>,
    %c0_68 = arith.constant 0 : index
    %c11 = arith.constant 11 : index
    %c0_69 = arith.constant 0 : index
    %c0_70 = arith.constant 0 : index
    %119 = vector.load %arg9[%c0_68, %c11, %c0_69, %c0_70] : memref<1x32x8x128xf32, #tpu.memory_space<vmem>>, vector<1x1x8x128xf32>
    %120 = vector.shape_cast %119 : vector<1x1x8x128xf32> to vector<8x128xf32>
    %121 = vector.shape_cast %115 : vector<8x128xf32> to vector<1x1x8x128xf32>
    tpu.vector_store %arg9[%c0_68, %c11, %c0_69, %c0_70], %121 {strides = array<i32>} : memref<1x32x8x128xf32, #tpu.memory_space<vmem>>, vector<1x1x8x128xf32>,
    %122 = arith.mulf %47, %53 : vector<8x128xf32>
    %123 = arith.mulf %49, %55 : vector<8x128xf32>
    %124 = arith.subf %122, %123 : vector<8x128xf32>
    %cst_71 = arith.constant 1.32110906 : f32
    %125 = vector.broadcast %cst_71 : f32 to vector<8x128xf32>
    %126 = arith.mulf %125, %124 : vector<8x128xf32>
    %127 = arith.addf %38, %126 : vector<8x128xf32>
    %128 = arith.mulf %47, %55 : vector<8x128xf32>
    %129 = arith.mulf %49, %53 : vector<8x128xf32>
    %130 = arith.addf %128, %129 : vector<8x128xf32>
    %cst_72 = arith.constant 1.32110906 : f32
    %131 = vector.broadcast %cst_72 : f32 to vector<8x128xf32>
    %132 = arith.mulf %131, %130 : vector<8x128xf32>
    %133 = arith.addf %38, %132 : vector<8x128xf32>
    %134 = arith.mulf %51, %51 : vector<8x128xf32>
    %135 = arith.mulf %38, %38 : vector<8x128xf32>
    %136 = arith.subf %134, %135 : vector<8x128xf32>
    %cst_73 = arith.constant 2.64221811 : f32
    %137 = vector.broadcast %cst_73 : f32 to vector<8x128xf32>
    %138 = arith.mulf %137, %136 : vector<8x128xf32>
    %139 = arith.addf %127, %138 : vector<8x128xf32>
    %140 = arith.mulf %51, %38 : vector<8x128xf32>
    %141 = arith.mulf %38, %51 : vector<8x128xf32>
    %142 = arith.addf %140, %141 : vector<8x128xf32>
    %cst_74 = arith.constant 2.64221811 : f32
    %143 = vector.broadcast %cst_74 : f32 to vector<8x128xf32>
    %144 = arith.mulf %143, %142 : vector<8x128xf32>
    %145 = arith.addf %133, %144 : vector<8x128xf32>
    %146 = arith.mulf %53, %47 : vector<8x128xf32>
    %147 = arith.mulf %55, %49 : vector<8x128xf32>
    %148 = arith.subf %146, %147 : vector<8x128xf32>
    %cst_75 = arith.constant 1.32110906 : f32
    %149 = vector.broadcast %cst_75 : f32 to vector<8x128xf32>
    %150 = arith.mulf %149, %148 : vector<8x128xf32>
    %151 = arith.addf %139, %150 : vector<8x128xf32>
    %152 = arith.mulf %53, %49 : vector<8x128xf32>
    %153 = arith.mulf %55, %47 : vector<8x128xf32>
    %154 = arith.addf %152, %153 : vector<8x128xf32>
    %cst_76 = arith.constant 1.32110906 : f32
    %155 = vector.broadcast %cst_76 : f32 to vector<8x128xf32>
    %156 = arith.mulf %155, %154 : vector<8x128xf32>
    %157 = arith.addf %145, %156 : vector<8x128xf32>
    %c0_77 = arith.constant 0 : index
    %c12 = arith.constant 12 : index
    %c0_78 = arith.constant 0 : index
    %c0_79 = arith.constant 0 : index
    %158 = vector.load %arg9[%c0_77, %c12, %c0_78, %c0_79] : memref<1x32x8x128xf32, #tpu.memory_space<vmem>>, vector<1x1x8x128xf32>
    %159 = vector.shape_cast %158 : vector<1x1x8x128xf32> to vector<8x128xf32>
    %160 = vector.shape_cast %151 : vector<8x128xf32> to vector<1x1x8x128xf32>
    tpu.vector_store %arg9[%c0_77, %c12, %c0_78, %c0_79], %160 {strides = array<i32>} : memref<1x32x8x128xf32, #tpu.memory_space<vmem>>, vector<1x1x8x128xf32>,
    %c0_80 = arith.constant 0 : index
    %c13 = arith.constant 13 : index
    %c0_81 = arith.constant 0 : index
    %c0_82 = arith.constant 0 : index
    %161 = vector.load %arg9[%c0_80, %c13, %c0_81, %c0_82] : memref<1x32x8x128xf32, #tpu.memory_space<vmem>>, vector<1x1x8x128xf32>
    %162 = vector.shape_cast %161 : vector<1x1x8x128xf32> to vector<8x128xf32>
    %163 = vector.shape_cast %157 : vector<8x128xf32> to vector<1x1x8x128xf32>
    tpu.vector_store %arg9[%c0_80, %c13, %c0_81, %c0_82], %163 {strides = array<i32>} : memref<1x32x8x128xf32, #tpu.memory_space<vmem>>, vector<1x1x8x128xf32>,
    %164 = arith.mulf %51, %53 : vector<8x128xf32>
    %165 = arith.mulf %38, %55 : vector<8x128xf32>
    %166 = arith.subf %164, %165 : vector<8x128xf32>
    %cst_83 = arith.constant 2.28822803 : f32
    %167 = vector.broadcast %cst_83 : f32 to vector<8x128xf32>
    %168 = arith.mulf %167, %166 : vector<8x128xf32>
    %169 = arith.addf %38, %168 : vector<8x128xf32>
    %170 = arith.mulf %51, %55 : vector<8x128xf32>
    %171 = arith.mulf %38, %53 : vector<8x128xf32>
    %172 = arith.addf %170, %171 : vector<8x128xf32>
    %cst_84 = arith.constant 2.28822803 : f32
    %173 = vector.broadcast %cst_84 : f32 to vector<8x128xf32>
    %174 = arith.mulf %173, %172 : vector<8x128xf32>
    %175 = arith.addf %38, %174 : vector<8x128xf32>
    %176 = arith.mulf %53, %51 : vector<8x128xf32>
    %177 = arith.mulf %55, %38 : vector<8x128xf32>
    %178 = arith.subf %176, %177 : vector<8x128xf32>
    %cst_85 = arith.constant 2.28822803 : f32
    %179 = vector.broadcast %cst_85 : f32 to vector<8x128xf32>
    %180 = arith.mulf %179, %178 : vector<8x128xf32>
    %181 = arith.addf %169, %180 : vector<8x128xf32>
    %182 = arith.mulf %53, %38 : vector<8x128xf32>
    %183 = arith.mulf %55, %51 : vector<8x128xf32>
    %184 = arith.addf %182, %183 : vector<8x128xf32>
    %cst_86 = arith.constant 2.28822803 : f32
    %185 = vector.broadcast %cst_86 : f32 to vector<8x128xf32>
    %186 = arith.mulf %185, %184 : vector<8x128xf32>
    %187 = arith.addf %175, %186 : vector<8x128xf32>
    %c0_87 = arith.constant 0 : index
    %c14 = arith.constant 14 : index
    %c0_88 = arith.constant 0 : index
    %c0_89 = arith.constant 0 : index
    %188 = vector.load %arg9[%c0_87, %c14, %c0_88, %c0_89] : memref<1x32x8x128xf32, #tpu.memory_space<vmem>>, vector<1x1x8x128xf32>
    %189 = vector.shape_cast %188 : vector<1x1x8x128xf32> to vector<8x128xf32>
    %190 = vector.shape_cast %181 : vector<8x128xf32> to vector<1x1x8x128xf32>
    tpu.vector_store %arg9[%c0_87, %c14, %c0_88, %c0_89], %190 {strides = array<i32>} : memref<1x32x8x128xf32, #tpu.memory_space<vmem>>, vector<1x1x8x128xf32>,
    %c0_90 = arith.constant 0 : index
    %c15 = arith.constant 15 : index
    %c0_91 = arith.constant 0 : index
    %c0_92 = arith.constant 0 : index
    %191 = vector.load %arg9[%c0_90, %c15, %c0_91, %c0_92] : memref<1x32x8x128xf32, #tpu.memory_space<vmem>>, vector<1x1x8x128xf32>
    %192 = vector.shape_cast %191 : vector<1x1x8x128xf32> to vector<8x128xf32>
    %193 = vector.shape_cast %187 : vector<8x128xf32> to vector<1x1x8x128xf32>
    tpu.vector_store %arg9[%c0_90, %c15, %c0_91, %c0_92], %193 {strides = array<i32>} : memref<1x32x8x128xf32, #tpu.memory_space<vmem>>, vector<1x1x8x128xf32>,
    %194 = arith.mulf %53, %53 : vector<8x128xf32>
    %195 = arith.mulf %55, %55 : vector<8x128xf32>
    %196 = arith.subf %194, %195 : vector<8x128xf32>
    %cst_93 = arith.constant 3.23604321 : f32
    %197 = vector.broadcast %cst_93 : f32 to vector<8x128xf32>
    %198 = arith.mulf %197, %196 : vector<8x128xf32>
    %199 = arith.addf %38, %198 : vector<8x128xf32>
    %200 = arith.mulf %53, %55 : vector<8x128xf32>
    %201 = arith.mulf %55, %53 : vector<8x128xf32>
    %202 = arith.addf %200, %201 : vector<8x128xf32>
    %cst_94 = arith.constant 3.23604321 : f32
    %203 = vector.broadcast %cst_94 : f32 to vector<8x128xf32>
    %204 = arith.mulf %203, %202 : vector<8x128xf32>
    %205 = arith.addf %38, %204 : vector<8x128xf32>
    %c0_95 = arith.constant 0 : index
    %c16 = arith.constant 16 : index
    %c0_96 = arith.constant 0 : index
    %c0_97 = arith.constant 0 : index
    %206 = vector.load %arg9[%c0_95, %c16, %c0_96, %c0_97] : memref<1x32x8x128xf32, #tpu.memory_space<vmem>>, vector<1x1x8x128xf32>
    %207 = vector.shape_cast %206 : vector<1x1x8x128xf32> to vector<8x128xf32>
    %208 = vector.shape_cast %199 : vector<8x128xf32> to vector<1x1x8x128xf32>
    tpu.vector_store %arg9[%c0_95, %c16, %c0_96, %c0_97], %208 {strides = array<i32>} : memref<1x32x8x128xf32, #tpu.memory_space<vmem>>, vector<1x1x8x128xf32>,
    %c0_98 = arith.constant 0 : index
    %c17 = arith.constant 17 : index
    %c0_99 = arith.constant 0 : index
    %c0_100 = arith.constant 0 : index
    %209 = vector.load %arg9[%c0_98, %c17, %c0_99, %c0_100] : memref<1x32x8x128xf32, #tpu.memory_space<vmem>>, vector<1x1x8x128xf32>
    %210 = vector.shape_cast %209 : vector<1x1x8x128xf32> to vector<8x128xf32>
    %211 = vector.shape_cast %205 : vector<8x128xf32> to vector<1x1x8x128xf32>
    tpu.vector_store %arg9[%c0_98, %c17, %c0_99, %c0_100], %211 {strides = array<i32>} : memref<1x32x8x128xf32, #tpu.memory_space<vmem>>, vector<1x1x8x128xf32>,
    %212 = arith.mulf %79, %47 : vector<8x128xf32>
    %213 = arith.mulf %85, %49 : vector<8x128xf32>
    %214 = arith.subf %212, %213 : vector<8x128xf32>
    %cst_101 = arith.constant 3.12631464 : f32
    %215 = vector.broadcast %cst_101 : f32 to vector<8x128xf32>
    %216 = arith.mulf %215, %214 : vector<8x128xf32>
    %217 = arith.addf %38, %216 : vector<8x128xf32>
    %218 = arith.mulf %79, %49 : vector<8x128xf32>
    %219 = arith.mulf %85, %47 : vector<8x128xf32>
    %220 = arith.addf %218, %219 : vector<8x128xf32>
    %cst_102 = arith.constant 3.12631464 : f32
    %221 = vector.broadcast %cst_102 : f32 to vector<8x128xf32>
    %222 = arith.mulf %221, %220 : vector<8x128xf32>
    %223 = arith.addf %38, %222 : vector<8x128xf32>
    %c0_103 = arith.constant 0 : index
    %c18 = arith.constant 18 : index
    %c0_104 = arith.constant 0 : index
    %c0_105 = arith.constant 0 : index
    %224 = vector.load %arg9[%c0_103, %c18, %c0_104, %c0_105] : memref<1x32x8x128xf32, #tpu.memory_space<vmem>>, vector<1x1x8x128xf32>
    %225 = vector.shape_cast %224 : vector<1x1x8x128xf32> to vector<8x128xf32>
    %226 = vector.shape_cast %217 : vector<8x128xf32> to vector<1x1x8x128xf32>
    tpu.vector_store %arg9[%c0_103, %c18, %c0_104, %c0_105], %226 {strides = array<i32>} : memref<1x32x8x128xf32, #tpu.memory_space<vmem>>, vector<1x1x8x128xf32>,
    %c0_106 = arith.constant 0 : index
    %c19 = arith.constant 19 : index
    %c0_107 = arith.constant 0 : index
    %c0_108 = arith.constant 0 : index
    %227 = vector.load %arg9[%c0_106, %c19, %c0_107, %c0_108] : memref<1x32x8x128xf32, #tpu.memory_space<vmem>>, vector<1x1x8x128xf32>
    %228 = vector.shape_cast %227 : vector<1x1x8x128xf32> to vector<8x128xf32>
    %229 = vector.shape_cast %223 : vector<8x128xf32> to vector<1x1x8x128xf32>
    tpu.vector_store %arg9[%c0_106, %c19, %c0_107, %c0_108], %229 {strides = array<i32>} : memref<1x32x8x128xf32, #tpu.memory_space<vmem>>, vector<1x1x8x128xf32>,
    %230 = arith.mulf %79, %51 : vector<8x128xf32>
    %231 = arith.mulf %85, %38 : vector<8x128xf32>
    %232 = arith.subf %230, %231 : vector<8x128xf32>
    %cst_109 = arith.constant 1.80497861 : f32
    %233 = vector.broadcast %cst_109 : f32 to vector<8x128xf32>
    %234 = arith.mulf %233, %232 : vector<8x128xf32>
    %235 = arith.addf %38, %234 : vector<8x128xf32>
    %236 = arith.mulf %79, %38 : vector<8x128xf32>
    %237 = arith.mulf %85, %51 : vector<8x128xf32>
    %238 = arith.addf %236, %237 : vector<8x128xf32>
    %cst_110 = arith.constant 1.80497861 : f32
    %239 = vector.broadcast %cst_110 : f32 to vector<8x128xf32>
    %240 = arith.mulf %239, %238 : vector<8x128xf32>
    %241 = arith.addf %38, %240 : vector<8x128xf32>
    %242 = arith.mulf %109, %47 : vector<8x128xf32>
    %243 = arith.mulf %115, %49 : vector<8x128xf32>
    %244 = arith.subf %242, %243 : vector<8x128xf32>
    %cst_111 = arith.constant 2.55262518 : f32
    %245 = vector.broadcast %cst_111 : f32 to vector<8x128xf32>
    %246 = arith.mulf %245, %244 : vector<8x128xf32>
    %247 = arith.addf %235, %246 : vector<8x128xf32>
    %248 = arith.mulf %109, %49 : vector<8x128xf32>
    %249 = arith.mulf %115, %47 : vector<8x128xf32>
    %250 = arith.addf %248, %249 : vector<8x128xf32>
    %cst_112 = arith.constant 2.55262518 : f32
    %251 = vector.broadcast %cst_112 : f32 to vector<8x128xf32>
    %252 = arith.mulf %251, %250 : vector<8x128xf32>
    %253 = arith.addf %241, %252 : vector<8x128xf32>
    %c0_113 = arith.constant 0 : index
    %c20 = arith.constant 20 : index
    %c0_114 = arith.constant 0 : index
    %c0_115 = arith.constant 0 : index
    %254 = vector.load %arg9[%c0_113, %c20, %c0_114, %c0_115] : memref<1x32x8x128xf32, #tpu.memory_space<vmem>>, vector<1x1x8x128xf32>
    %255 = vector.shape_cast %254 : vector<1x1x8x128xf32> to vector<8x128xf32>
    %256 = vector.shape_cast %247 : vector<8x128xf32> to vector<1x1x8x128xf32>
    tpu.vector_store %arg9[%c0_113, %c20, %c0_114, %c0_115], %256 {strides = array<i32>} : memref<1x32x8x128xf32, #tpu.memory_space<vmem>>, vector<1x1x8x128xf32>,
    %c0_116 = arith.constant 0 : index
    %c21 = arith.constant 21 : index
    %c0_117 = arith.constant 0 : index
    %c0_118 = arith.constant 0 : index
    %257 = vector.load %arg9[%c0_116, %c21, %c0_117, %c0_118] : memref<1x32x8x128xf32, #tpu.memory_space<vmem>>, vector<1x1x8x128xf32>
    %258 = vector.shape_cast %257 : vector<1x1x8x128xf32> to vector<8x128xf32>
    %259 = vector.shape_cast %253 : vector<8x128xf32> to vector<1x1x8x128xf32>
    tpu.vector_store %arg9[%c0_116, %c21, %c0_117, %c0_118], %259 {strides = array<i32>} : memref<1x32x8x128xf32, #tpu.memory_space<vmem>>, vector<1x1x8x128xf32>,
    %260 = arith.mulf %79, %53 : vector<8x128xf32>
    %261 = arith.mulf %85, %55 : vector<8x128xf32>
    %262 = arith.subf %260, %261 : vector<8x128xf32>
    %cst_119 = arith.constant 0.807210981 : f32
    %263 = vector.broadcast %cst_119 : f32 to vector<8x128xf32>
    %264 = arith.mulf %263, %262 : vector<8x128xf32>
    %265 = arith.addf %38, %264 : vector<8x128xf32>
    %266 = arith.mulf %79, %55 : vector<8x128xf32>
    %267 = arith.mulf %85, %53 : vector<8x128xf32>
    %268 = arith.addf %266, %267 : vector<8x128xf32>
    %cst_120 = arith.constant 0.807210981 : f32
    %269 = vector.broadcast %cst_120 : f32 to vector<8x128xf32>
    %270 = arith.mulf %269, %268 : vector<8x128xf32>
    %271 = arith.addf %38, %270 : vector<8x128xf32>
    %272 = arith.mulf %109, %51 : vector<8x128xf32>
    %273 = arith.mulf %115, %38 : vector<8x128xf32>
    %274 = arith.subf %272, %273 : vector<8x128xf32>
    %cst_121 = arith.constant 2.28313756 : f32
    %275 = vector.broadcast %cst_121 : f32 to vector<8x128xf32>
    %276 = arith.mulf %275, %274 : vector<8x128xf32>
    %277 = arith.addf %265, %276 : vector<8x128xf32>
    %278 = arith.mulf %109, %38 : vector<8x128xf32>
    %279 = arith.mulf %115, %51 : vector<8x128xf32>
    %280 = arith.addf %278, %279 : vector<8x128xf32>
    %cst_122 = arith.constant 2.28313756 : f32
    %281 = vector.broadcast %cst_122 : f32 to vector<8x128xf32>
    %282 = arith.mulf %281, %280 : vector<8x128xf32>
    %283 = arith.addf %271, %282 : vector<8x128xf32>
    %284 = arith.mulf %151, %47 : vector<8x128xf32>
    %285 = arith.mulf %157, %49 : vector<8x128xf32>
    %286 = arith.subf %284, %285 : vector<8x128xf32>
    %cst_123 = arith.constant 1.97725511 : f32
    %287 = vector.broadcast %cst_123 : f32 to vector<8x128xf32>
    %288 = arith.mulf %287, %286 : vector<8x128xf32>
    %289 = arith.addf %277, %288 : vector<8x128xf32>
    %290 = arith.mulf %151, %49 : vector<8x128xf32>
    %291 = arith.mulf %157, %47 : vector<8x128xf32>
    %292 = arith.addf %290, %291 : vector<8x128xf32>
    %cst_124 = arith.constant 1.97725511 : f32
    %293 = vector.broadcast %cst_124 : f32 to vector<8x128xf32>
    %294 = arith.mulf %293, %292 : vector<8x128xf32>
    %295 = arith.addf %283, %294 : vector<8x128xf32>
    %c0_125 = arith.constant 0 : index
    %c22 = arith.constant 22 : index
    %c0_126 = arith.constant 0 : index
    %c0_127 = arith.constant 0 : index
    %296 = vector.load %arg9[%c0_125, %c22, %c0_126, %c0_127] : memref<1x32x8x128xf32, #tpu.memory_space<vmem>>, vector<1x1x8x128xf32>
    %297 = vector.shape_cast %296 : vector<1x1x8x128xf32> to vector<8x128xf32>
    %298 = vector.shape_cast %289 : vector<8x128xf32> to vector<1x1x8x128xf32>
    tpu.vector_store %arg9[%c0_125, %c22, %c0_126, %c0_127], %298 {strides = array<i32>} : memref<1x32x8x128xf32, #tpu.memory_space<vmem>>, vector<1x1x8x128xf32>,
    %c0_128 = arith.constant 0 : index
    %c23 = arith.constant 23 : index
    %c0_129 = arith.constant 0 : index
    %c0_130 = arith.constant 0 : index
    %299 = vector.load %arg9[%c0_128, %c23, %c0_129, %c0_130] : memref<1x32x8x128xf32, #tpu.memory_space<vmem>>, vector<1x1x8x128xf32>
    %300 = vector.shape_cast %299 : vector<1x1x8x128xf32> to vector<8x128xf32>
    %301 = vector.shape_cast %295 : vector<8x128xf32> to vector<1x1x8x128xf32>
    tpu.vector_store %arg9[%c0_128, %c23, %c0_129, %c0_130], %301 {strides = array<i32>} : memref<1x32x8x128xf32, #tpu.memory_space<vmem>>, vector<1x1x8x128xf32>,
    %302 = arith.mulf %109, %53 : vector<8x128xf32>
    %303 = arith.mulf %115, %55 : vector<8x128xf32>
    %304 = arith.subf %302, %303 : vector<8x128xf32>
    %cst_131 = arith.constant 1.39813042 : f32
    %305 = vector.broadcast %cst_131 : f32 to vector<8x128xf32>
    %306 = arith.mulf %305, %304 : vector<8x128xf32>
    %307 = arith.addf %38, %306 : vector<8x128xf32>
    %308 = arith.mulf %109, %55 : vector<8x128xf32>
    %309 = arith.mulf %115, %53 : vector<8x128xf32>
    %310 = arith.addf %308, %309 : vector<8x128xf32>
    %cst_132 = arith.constant 1.39813042 : f32
    %311 = vector.broadcast %cst_132 : f32 to vector<8x128xf32>
    %312 = arith.mulf %311, %310 : vector<8x128xf32>
    %313 = arith.addf %38, %312 : vector<8x128xf32>
    %314 = arith.mulf %151, %51 : vector<8x128xf32>
    %315 = arith.mulf %157, %38 : vector<8x128xf32>
    %316 = arith.subf %314, %315 : vector<8x128xf32>
    %cst_133 = arith.constant 2.42163301 : f32
    %317 = vector.broadcast %cst_133 : f32 to vector<8x128xf32>
    %318 = arith.mulf %317, %316 : vector<8x128xf32>
    %319 = arith.addf %307, %318 : vector<8x128xf32>
    %320 = arith.mulf %151, %38 : vector<8x128xf32>
    %321 = arith.mulf %157, %51 : vector<8x128xf32>
    %322 = arith.addf %320, %321 : vector<8x128xf32>
    %cst_134 = arith.constant 2.42163301 : f32
    %323 = vector.broadcast %cst_134 : f32 to vector<8x128xf32>
    %324 = arith.mulf %323, %322 : vector<8x128xf32>
    %325 = arith.addf %313, %324 : vector<8x128xf32>
    %326 = arith.mulf %181, %47 : vector<8x128xf32>
    %327 = arith.mulf %187, %49 : vector<8x128xf32>
    %328 = arith.subf %326, %327 : vector<8x128xf32>
    %cst_135 = arith.constant 1.39813042 : f32
    %329 = vector.broadcast %cst_135 : f32 to vector<8x128xf32>
    %330 = arith.mulf %329, %328 : vector<8x128xf32>
    %331 = arith.addf %319, %330 : vector<8x128xf32>
    %332 = arith.mulf %181, %49 : vector<8x128xf32>
    %333 = arith.mulf %187, %47 : vector<8x128xf32>
    %334 = arith.addf %332, %333 : vector<8x128xf32>
    %cst_136 = arith.constant 1.39813042 : f32
    %335 = vector.broadcast %cst_136 : f32 to vector<8x128xf32>
    %336 = arith.mulf %335, %334 : vector<8x128xf32>
    %337 = arith.addf %325, %336 : vector<8x128xf32>
    %c0_137 = arith.constant 0 : index
    %c24 = arith.constant 24 : index
    %c0_138 = arith.constant 0 : index
    %c0_139 = arith.constant 0 : index
    %338 = vector.load %arg9[%c0_137, %c24, %c0_138, %c0_139] : memref<1x32x8x128xf32, #tpu.memory_space<vmem>>, vector<1x1x8x128xf32>
    %339 = vector.shape_cast %338 : vector<1x1x8x128xf32> to vector<8x128xf32>
    %340 = vector.shape_cast %331 : vector<8x128xf32> to vector<1x1x8x128xf32>
    tpu.vector_store %arg9[%c0_137, %c24, %c0_138, %c0_139], %340 {strides = array<i32>} : memref<1x32x8x128xf32, #tpu.memory_space<vmem>>, vector<1x1x8x128xf32>,
    %c0_140 = arith.constant 0 : index
    %c25 = arith.constant 25 : index
    %c0_141 = arith.constant 0 : index
    %c0_142 = arith.constant 0 : index
    %341 = vector.load %arg9[%c0_140, %c25, %c0_141, %c0_142] : memref<1x32x8x128xf32, #tpu.memory_space<vmem>>, vector<1x1x8x128xf32>
    %342 = vector.shape_cast %341 : vector<1x1x8x128xf32> to vector<8x128xf32>
    %343 = vector.shape_cast %337 : vector<8x128xf32> to vector<1x1x8x128xf32>
    tpu.vector_store %arg9[%c0_140, %c25, %c0_141, %c0_142], %343 {strides = array<i32>} : memref<1x32x8x128xf32, #tpu.memory_space<vmem>>, vector<1x1x8x128xf32>,
    %344 = arith.mulf %151, %53 : vector<8x128xf32>
    %345 = arith.mulf %157, %55 : vector<8x128xf32>
    %346 = arith.subf %344, %345 : vector<8x128xf32>
    %cst_143 = arith.constant 1.97725511 : f32
    %347 = vector.broadcast %cst_143 : f32 to vector<8x128xf32>
    %348 = arith.mulf %347, %346 : vector<8x128xf32>
    %349 = arith.addf %38, %348 : vector<8x128xf32>
    %350 = arith.mulf %151, %55 : vector<8x128xf32>
    %351 = arith.mulf %157, %53 : vector<8x128xf32>
    %352 = arith.addf %350, %351 : vector<8x128xf32>
    %cst_144 = arith.constant 1.97725511 : f32
    %353 = vector.broadcast %cst_144 : f32 to vector<8x128xf32>
    %354 = arith.mulf %353, %352 : vector<8x128xf32>
    %355 = arith.addf %38, %354 : vector<8x128xf32>
    %356 = arith.mulf %181, %51 : vector<8x128xf32>
    %357 = arith.mulf %187, %38 : vector<8x128xf32>
    %358 = arith.subf %356, %357 : vector<8x128xf32>
    %cst_145 = arith.constant 2.28313756 : f32
    %359 = vector.broadcast %cst_145 : f32 to vector<8x128xf32>
    %360 = arith.mulf %359, %358 : vector<8x128xf32>
    %361 = arith.addf %349, %360 : vector<8x128xf32>
    %362 = arith.mulf %181, %38 : vector<8x128xf32>
    %363 = arith.mulf %187, %51 : vector<8x128xf32>
    %364 = arith.addf %362, %363 : vector<8x128xf32>
    %cst_146 = arith.constant 2.28313756 : f32
    %365 = vector.broadcast %cst_146 : f32 to vector<8x128xf32>
    %366 = arith.mulf %365, %364 : vector<8x128xf32>
    %367 = arith.addf %355, %366 : vector<8x128xf32>
    %368 = arith.mulf %199, %47 : vector<8x128xf32>
    %369 = arith.mulf %205, %49 : vector<8x128xf32>
    %370 = arith.subf %368, %369 : vector<8x128xf32>
    %cst_147 = arith.constant 0.807210981 : f32
    %371 = vector.broadcast %cst_147 : f32 to vector<8x128xf32>
    %372 = arith.mulf %371, %370 : vector<8x128xf32>
    %373 = arith.addf %361, %372 : vector<8x128xf32>
    %374 = arith.mulf %199, %49 : vector<8x128xf32>
    %375 = arith.mulf %205, %47 : vector<8x128xf32>
    %376 = arith.addf %374, %375 : vector<8x128xf32>
    %cst_148 = arith.constant 0.807210981 : f32
    %377 = vector.broadcast %cst_148 : f32 to vector<8x128xf32>
    %378 = arith.mulf %377, %376 : vector<8x128xf32>
    %379 = arith.addf %367, %378 : vector<8x128xf32>
    %c0_149 = arith.constant 0 : index
    %c26 = arith.constant 26 : index
    %c0_150 = arith.constant 0 : index
    %c0_151 = arith.constant 0 : index
    %380 = vector.load %arg9[%c0_149, %c26, %c0_150, %c0_151] : memref<1x32x8x128xf32, #tpu.memory_space<vmem>>, vector<1x1x8x128xf32>
    %381 = vector.shape_cast %380 : vector<1x1x8x128xf32> to vector<8x128xf32>
    %382 = vector.shape_cast %373 : vector<8x128xf32> to vector<1x1x8x128xf32>
    tpu.vector_store %arg9[%c0_149, %c26, %c0_150, %c0_151], %382 {strides = array<i32>} : memref<1x32x8x128xf32, #tpu.memory_space<vmem>>, vector<1x1x8x128xf32>,
    %c0_152 = arith.constant 0 : index
    %c27 = arith.constant 27 : index
    %c0_153 = arith.constant 0 : index
    %c0_154 = arith.constant 0 : index
    %383 = vector.load %arg9[%c0_152, %c27, %c0_153, %c0_154] : memref<1x32x8x128xf32, #tpu.memory_space<vmem>>, vector<1x1x8x128xf32>
    %384 = vector.shape_cast %383 : vector<1x1x8x128xf32> to vector<8x128xf32>
    %385 = vector.shape_cast %379 : vector<8x128xf32> to vector<1x1x8x128xf32>
    tpu.vector_store %arg9[%c0_152, %c27, %c0_153, %c0_154], %385 {strides = array<i32>} : memref<1x32x8x128xf32, #tpu.memory_space<vmem>>, vector<1x1x8x128xf32>,
    %386 = arith.mulf %181, %53 : vector<8x128xf32>
    %387 = arith.mulf %187, %55 : vector<8x128xf32>
    %388 = arith.subf %386, %387 : vector<8x128xf32>
    %cst_155 = arith.constant 2.55262518 : f32
    %389 = vector.broadcast %cst_155 : f32 to vector<8x128xf32>
    %390 = arith.mulf %389, %388 : vector<8x128xf32>
    %391 = arith.addf %38, %390 : vector<8x128xf32>
    %392 = arith.mulf %181, %55 : vector<8x128xf32>
    %393 = arith.mulf %187, %53 : vector<8x128xf32>
    %394 = arith.addf %392, %393 : vector<8x128xf32>
    %cst_156 = arith.constant 2.55262518 : f32
    %395 = vector.broadcast %cst_156 : f32 to vector<8x128xf32>
    %396 = arith.mulf %395, %394 : vector<8x128xf32>
    %397 = arith.addf %38, %396 : vector<8x128xf32>
    %398 = arith.mulf %199, %51 : vector<8x128xf32>
    %399 = arith.mulf %205, %38 : vector<8x128xf32>
    %400 = arith.subf %398, %399 : vector<8x128xf32>
    %cst_157 = arith.constant 1.80497861 : f32
    %401 = vector.broadcast %cst_157 : f32 to vector<8x128xf32>
    %402 = arith.mulf %401, %400 : vector<8x128xf32>
    %403 = arith.addf %391, %402 : vector<8x128xf32>
    %404 = arith.mulf %199, %38 : vector<8x128xf32>
    %405 = arith.mulf %205, %51 : vector<8x128xf32>
    %406 = arith.addf %404, %405 : vector<8x128xf32>
    %cst_158 = arith.constant 1.80497861 : f32
    %407 = vector.broadcast %cst_158 : f32 to vector<8x128xf32>
    %408 = arith.mulf %407, %406 : vector<8x128xf32>
    %409 = arith.addf %397, %408 : vector<8x128xf32>
    %c0_159 = arith.constant 0 : index
    %c28 = arith.constant 28 : index
    %c0_160 = arith.constant 0 : index
    %c0_161 = arith.constant 0 : index
    %410 = vector.load %arg9[%c0_159, %c28, %c0_160, %c0_161] : memref<1x32x8x128xf32, #tpu.memory_space<vmem>>, vector<1x1x8x128xf32>
    %411 = vector.shape_cast %410 : vector<1x1x8x128xf32> to vector<8x128xf32>
    %412 = vector.shape_cast %403 : vector<8x128xf32> to vector<1x1x8x128xf32>
    tpu.vector_store %arg9[%c0_159, %c28, %c0_160, %c0_161], %412 {strides = array<i32>} : memref<1x32x8x128xf32, #tpu.memory_space<vmem>>, vector<1x1x8x128xf32>,
    %c0_162 = arith.constant 0 : index
    %c29 = arith.constant 29 : index
    %c0_163 = arith.constant 0 : index
    %c0_164 = arith.constant 0 : index
    %413 = vector.load %arg9[%c0_162, %c29, %c0_163, %c0_164] : memref<1x32x8x128xf32, #tpu.memory_space<vmem>>, vector<1x1x8x128xf32>
    %414 = vector.shape_cast %413 : vector<1x1x8x128xf32> to vector<8x128xf32>
    %415 = vector.shape_cast %409 : vector<8x128xf32> to vector<1x1x8x128xf32>
    tpu.vector_store %arg9[%c0_162, %c29, %c0_163, %c0_164], %415 {strides = array<i32>} : memref<1x32x8x128xf32, #tpu.memory_space<vmem>>, vector<1x1x8x128xf32>,
    %416 = arith.mulf %199, %53 : vector<8x128xf32>
    %417 = arith.mulf %205, %55 : vector<8x128xf32>
    %418 = arith.subf %416, %417 : vector<8x128xf32>
    %cst_165 = arith.constant 3.12631464 : f32
    %419 = vector.broadcast %cst_165 : f32 to vector<8x128xf32>
    %420 = arith.mulf %419, %418 : vector<8x128xf32>
    %421 = arith.addf %38, %420 : vector<8x128xf32>
    %422 = arith.mulf %199, %55 : vector<8x128xf32>
    %423 = arith.mulf %205, %53 : vector<8x128xf32>
    %424 = arith.addf %422, %423 : vector<8x128xf32>
    %cst_166 = arith.constant 3.12631464 : f32
    %425 = vector.broadcast %cst_166 : f32 to vector<8x128xf32>
    %426 = arith.mulf %425, %424 : vector<8x128xf32>
    %427 = arith.addf %38, %426 : vector<8x128xf32>
    %c0_167 = arith.constant 0 : index
    %c30 = arith.constant 30 : index
    %c0_168 = arith.constant 0 : index
    %c0_169 = arith.constant 0 : index
    %428 = vector.load %arg9[%c0_167, %c30, %c0_168, %c0_169] : memref<1x32x8x128xf32, #tpu.memory_space<vmem>>, vector<1x1x8x128xf32>
    %429 = vector.shape_cast %428 : vector<1x1x8x128xf32> to vector<8x128xf32>
    %430 = vector.shape_cast %421 : vector<8x128xf32> to vector<1x1x8x128xf32>
    tpu.vector_store %arg9[%c0_167, %c30, %c0_168, %c0_169], %430 {strides = array<i32>} : memref<1x32x8x128xf32, #tpu.memory_space<vmem>>, vector<1x1x8x128xf32>,
    %c0_170 = arith.constant 0 : index
    %c31 = arith.constant 31 : index
    %c0_171 = arith.constant 0 : index
    %c0_172 = arith.constant 0 : index
    %431 = vector.load %arg9[%c0_170, %c31, %c0_171, %c0_172] : memref<1x32x8x128xf32, #tpu.memory_space<vmem>>, vector<1x1x8x128xf32>
    %432 = vector.shape_cast %431 : vector<1x1x8x128xf32> to vector<8x128xf32>
    %433 = vector.shape_cast %427 : vector<8x128xf32> to vector<1x1x8x128xf32>
    tpu.vector_store %arg9[%c0_170, %c31, %c0_171, %c0_172], %433 {strides = array<i32>} : memref<1x32x8x128xf32, #tpu.memory_space<vmem>>, vector<1x1x8x128xf32>,
    return
  }
  func.func @transform_0(%arg0: i32, %arg1: i32, %arg2: i32) -> (i32, i32, i32) {
    %c0_i32 = arith.constant 0 : i32
    %c0_i32_0 = arith.constant 0 : i32
    return %arg0, %arg1, %c0_i32 : i32, i32, i32
  }
  func.func @transform_1(%arg0: i32, %arg1: i32, %arg2: i32) -> (i32, i32, i32) {
    %c0_i32 = arith.constant 0 : i32
    %c0_i32_0 = arith.constant 0 : i32
    return %arg0, %arg1, %c0_i32 : i32, i32, i32
  }
  func.func @transform_2(%arg0: i32, %arg1: i32, %arg2: i32) -> (i32, i32, i32) {
    %c0_i32 = arith.constant 0 : i32
    %c0_i32_0 = arith.constant 0 : i32
    return %arg0, %arg1, %c0_i32 : i32, i32, i32
  }
  func.func @transform_3(%arg0: i32, %arg1: i32, %arg2: i32) -> (i32, i32, i32) {
    %c0_i32 = arith.constant 0 : i32
    %c0_i32_0 = arith.constant 0 : i32
    return %arg0, %c0_i32, %arg2 : i32, i32, i32
  }
  func.func @transform_4(%arg0: i32, %arg1: i32, %arg2: i32) -> (i32, i32, i32) {
    %c0_i32 = arith.constant 0 : i32
    %c0_i32_0 = arith.constant 0 : i32
    return %arg0, %c0_i32, %arg2 : i32, i32, i32
  }
  func.func @transform_5(%arg0: i32, %arg1: i32, %arg2: i32) -> (i32, i32, i32) {
    %c0_i32 = arith.constant 0 : i32
    %c0_i32_0 = arith.constant 0 : i32
    return %arg0, %c0_i32, %arg2 : i32, i32, i32
  }
  func.func @transform_6(%arg0: i32, %arg1: i32, %arg2: i32) -> (i32, i32, i32, i32) {
    %c0_i32 = arith.constant 0 : i32
    %c0_i32_0 = arith.constant 0 : i32
    return %arg0, %c0_i32, %arg1, %arg2 : i32, i32, i32, i32
  }
  func.func @transform_7(%arg0: i32, %arg1: i32, %arg2: i32) -> (i32, i32, i32) {
    %c0_i32 = arith.constant 0 : i32
    return %arg0, %arg1, %arg2 : i32, i32, i32
  }
}

</mosaic_0001>

<bundles_post_ra>
// kernel: tpu_custom_call.1
= control target key start
LH: loop header
LB: loop body
LE: loop exit
PB: predicated region body
PF: predicated region fallthrough
CT: control target
= control target key end

     0   :  { %s1623_s0 = inlined_call_operand.vmem [shape: f32[2,8,1], index: 0, kind: input, shape index: {}]   ;;  %s1624_s1 = inlined_call_operand.vmem [shape: f32[2,8,1], index: 1, kind: input, shape index: {}]   ;;  %s1625_s2 = inlined_call_operand.vmem [shape: f32[2,8,1], index: 2, kind: input, shape index: {}]   ;;  %s1626_s3 = inlined_call_operand.vmem [shape: f32[2,1,128], index: 3, kind: input, shape index: {}]   ;;  %s1627_s4 = inlined_call_operand.vmem [shape: f32[2,1,128], index: 4, kind: input, shape index: {}]   ;;  %s1628_s5 = inlined_call_operand.vmem [shape: f32[2,1,128], index: 5, kind: input, shape index: {}]   ;;  %s1629_s6 = inlined_call_operand.hbm [shape: f32[2,32,8,128], index: 6, kind: output, shape index: {0}]   ;;  %s1630_s7 = inlined_call_operand.hbm [shape: f32[2,8,128], index: 7, kind: output, shape index: {1}]  }
   0x1   :  { %1633 = sst [smem:[#allocation11_spill]] %s1626_s3 }
   0x2   :  { %13 = vsyncpa [#allocation3], 0 }
   0x3   :  { %15 = vsyncpa [#allocation3 + $0x1], 0 }
   0x4   :  { %16 = vsyncpa [#allocation5], 0 }
   0x5   :  { %18 = vsyncpa [#allocation5 + $0x1], 0  ;;  %s1279_s24 = smov 0   ;;  %s1281_s25 = smov 0  }
   0x6   :  { %s1283_s26 = smov 0   ;;  %s1285_s27 = smov 0  }
   0x7   :  { %s1287_s28 = smov 0   ;;  %s1289_s29 = smov 0  }
   0x8 LB: > { %1634 = sst [smem:[#allocation8_spill]] %s1228_s28  ;;  %s1001_s30 = sadd.s32 4294967295, %s1232_s29   ;;  %s1232_s29 = sphi %s1289_s29, %s24_s29   ;;  %s1228_s28 = sphi %s1287_s28, %s1642_s28   ;;  %s1224_s27 = sphi %s1285_s27, %s1641_s27   ;;  %s1220_s26 = sphi %s1283_s26, %s1645_s26   ;;  %s1216_s25 = sphi %s1281_s25, %s1644_s25   ;;  %s1212_s24 = sphi %s1279_s24, %s1643_s24  }
   0x9   : > { %s1002_s8 = sadd.s32 4294967294, %s1232_s29   ;;  %s43_s9 = sadd.s32 1, %s1228_s28 }
   0xa   : > { %s222_s10 = sadd.s32 1, %s1220_s26  ;;  %p45_p0 = scmp.ge.s32.totalorder %s43_s9, 2 }
   0xb   : > { %p232_p1 = scmp.ne.s32.totalorder %s1220_s26, %s1216_s25  ;;  %p233_p2 = scmp.eq.s32.totalorder %s1001_s30, 1 }
   0xc   : > { %p238_p3 = scmp.ne.s32.totalorder %s1216_s25, %s1212_s24  ;;  %s1647_s9 = smov (%p45_p0, %s43_s9), 0 }
   0xd   : > { %1635 = sst [smem:[#allocation9_spill]] %s1647_s9  ;;  %p1319_p4 = por %p233_p2, %p232_p1 }
   0xe   : > { %p239_p5 = scmp.eq.s32.totalorder %s1002_s8, 1  ;;  %s215_s12 = ssub.s32 %s1228_s28, %s1647_s9 }
   0xf   : > { %p1005_p6 = scmp.ge.s32.totalorder %s1232_s29, 1  ;;  %p220_p7 = scmp.eq.s32.totalorder %s215_s12, 0 }
  0x10   : > { %p1326_p8 = por %p239_p5, %p238_p3  ;;  %p344_p9 = scmp.lt.s32.totalorder %s1232_s29, 3 }
  0x11   : > { %s1332_s14 = scalar_select %p220_p7, %s1220_s26, %s222_s10  }
  0x12   : > { %p345_p10 = pnand %p1005_p6, %p344_p9 }
  0x13   : > { %1638 = sst [smem:[#allocation10_spill]] %s1332_s14  ;;  %p415_p11 = scmp.lt.s32.totalorder (!%p345_p10), %s1224_s27, 1 }
  0x14   : > { %348 = sbr.rel (%p345_p10) target bundleno = 249 (0xf9), region = 44  ;;  %s1639_s3 = sld [smem:[#allocation11_spill]] (!%p345_p10) }
  0x15   : > { %s1049_s14 = sshll.u32 (!%p345_p10), %s1224_s27, 8  ;;  %s1046_s21 = sshll.u32 (!%p345_p10), %s1224_s27, 3 }
  0x16   : > { %s819_s10 = scalar_lea.hbm (!%p345_p10), %s1630_s7, %s1046_s21 }
  0x17   : > { %s823_s18 = sshll.u32 (!%p345_p10), %s819_s10, 4  ;;  %s1570_s18 = int_to_ptr.hbm [resolvable:$true] %s823_s18 }
  0x19   : > { %v1234_v0 = vmov 0   ;;  %s416_s15 = scalar_select %p415_p11, %s1224_s27, 1 }
  0x1a   : > { %1115 = vset.pattern.permute.xlu0 %v1234_v0  ;;  %1116 = vset.pattern.permute.xlu1 %v1234_v0 }
  0x1b   : > { %s1008_s16 = sshll.u32 %s416_s15, 3  ;;  %s441_s19 = scalar_lea.vmem %s1639_s3, %s416_s15 }
  0x1c   : > { %s421_s22 = scalar_lea.vmem %s1623_s0, %s1008_s16  ;;  %s435_s8 = scalar_lea.vmem %s1625_s2, %s1008_s16  ;;  %v1117_v5 = vld [vmem:[%s441_s19] ss:$0 sm:$0xff] }
  0x1d   : > { %v454_v1 = vld [vmem:[%s421_s22] sm:$0xff]  ;;  %s447_s9 = scalar_lea.vmem %s1627_s4, %s416_s15  ;;  %s453_s17 = scalar_lea.vmem %s1628_s5, %s416_s15 }
  0x1e   : > { %462 = vperm.xlu0 %1115, %v454_v1   ;;  %v456_v2 = vld [vmem:[%s435_s8] sm:$0xff]  ;;  %s428_s20 = scalar_lea.vmem %s1624_s1, %s1008_s16  ;;  %s1360_s3 = sand.u32 1, %s1216_s25  }
  0x1f   : > { %480 = vperm.xlu1 %1116, %v456_v2   ;;  %v455_v3 = vld [vmem:[%s428_s20] sm:$0xff]  ;;  %s1006_s28 = sshll.u32 %s1360_s3, 8  ;;  %s801_s19 = scalar_lea.hbm %s1629_s6, %s1049_s14 }
  0x20   : > { %v1119_v6 = vld [vmem:[%s453_s17] ss:$0 sm:$0xff]  ;;  %s1007_s22 = sshll.u32 %s1360_s3, 3  ;;  %s804_s30 = sshll.u32 %s801_s19, 4  ;;  %s1559_s30 = int_to_ptr.hbm [resolvable:$true] %s804_s30 }
  0x21   : > { %v1118_v8 = vld [vmem:[%s447_s9] ss:$0 sm:$0xff]  ;;  %s1378_s9 = scalar_lea.vmem [#allocation2], %s1006_s28  ;;  %s1562_s12 = scalar_lea.vmem [#allocation4], %s1007_s22 }
  0x22   : > { %s802_s23 = sshll.u32 %s1378_s9, 4  ;;  %s821_s17 = sshll.u32 %s1562_s12, 4  ;;  %s1557_s23 = int_to_ptr.vmem [resolvable:$true] %s802_s23  ;;  %s1568_s17 = int_to_ptr.vmem [resolvable:$true] %s821_s17 }
  0x23   : > { %s783_s20 = scalar_lea.sflag [#allocation3], %s1360_s3  ;;  %s1136_s28 = sshra.s32 %s1559_s30, 4  ;;  %s1137_s28 = int_to_ptr.hbm [resolvable:$true] %s1136_s28 }
  0x24   : > { %s1138_s14 = scalar_lea.hbm %s1137_s28, 256  ;;  %s1142_s19 = scalar_lea.hbm %s1629_s6, 512 }
  0x25   : > { %p1139_p12 = scmp.ne.s32.totalorder %s1137_s28, %s1138_s14  ;;  %p1143_p1 = scmp.lt.s32.totalorder %s1137_s28, %s1629_s6 }
  0x26   : > { %471 = vperm.xlu0 %1115, %v455_v3   ;;  %p1144_p2 = scmp.lt.s32.totalorder %s1142_s19, %s1138_s14 }
  0x27   : > { %p1140_p13 = pnand %p1139_p12, %p1319_p4 }
  0x28   : > { %p1145_p3 = por %p1144_p2, %p1143_p1 }
  0x29   : > { %p1141_p0 = pneg %p1140_p13 }
  0x2b   : > { %p1146_p5 = pnand %p1145_p3, %p1141_p0 }
  0x90   : > { %v463_v4 = vpop.permute.xlu0 %462 }
  0x91   : > { %v481_v7 = vpop.permute.xlu1 %480  ;;  %v468_v9 = vsub.f32 %v463_v4, %v1117_v5 }
  0x92   : > { %v486_v10 = vsub.f32 %v481_v7, %v1119_v6 }
  0x93   : > { %v487_v13 = vmul.f32 %v468_v9, %v468_v9 }
  0x94   : > { %v490_v15 = vmul.f32 %v486_v10, %v486_v10 }
  0x98   : > { %v472_v11 = vpop.permute.xlu0 %471 }
  0x99   : > { %v477_v12 = vsub.f32 %v472_v11, %v1118_v8 }
  0x9b   : > { %v488_v14 = vmul.f32 %v477_v12, %v477_v12 }
  0x9d   : > { %v489_v16 = vadd.f32 %v488_v14, %v487_v13 }
  0x9f   : > { %v1354_v17 = vadd.f32 %v490_v15, %v489_v16 }
  0xa1   : > { %1120 = vrsqrt.f32 %v1354_v17  ;;  %vm512_vm1 = vweird.f32 %v1354_v17  ;;  %vm505_vm3 = vcmp.gt.f32.partialorder %v1354_v17, 0.0  ;;  %vm499_vm4 = vcmp.eq.f32.partialorder %v1354_v17, inf }
  0xa2   : > { %v502_v35 = vand.u32 2147483648, %v1354_v17  ;;  %vm501_vm5 = vcmp.eq.f32.partialorder %v1354_v17, 0.0 }
  0xa7   : > { %v1121_v18 = vpop.eup %1120 }
  0xa8   : > { %v493_v19 = vmul.f32 %v1121_v18, %v1354_v17  ;;  %vm513_vm0 = vweird.f32 %v1121_v18 }
  0xa9   : > { %vm514_vm2 = vmor %vm512_vm1, %vm513_vm0 }
  0xaa   : > { %v494_v20 = vmul.f32 %v1121_v18, %v493_v19 }
  0xac   : > { %v495_v21 = vmul.f32 0.5, %v494_v20 }
  0xae   : > { %v496_v22 = vsub.f32 1.5, %v495_v21 }
  0xb0   : > { %v497_v23 = vmul.f32 %v1121_v18, %v496_v22 }
  0xb2   : > { %v515_v24 = vsel %vm514_vm2, %v1121_v18, %v497_v23  ;;  %v498_v29 = vmul.f32 %v497_v23, %v1354_v17 }
  0xb3   : > { %v516_v25 = vsel %vm505_vm3, %v515_v24, 0.0 }
  0xb4   : > { %v517_v26 = vmul.f32 %v516_v25, %v468_v9  ;;  %v518_v27 = vmul.f32 %v516_v25, %v477_v12  ;;  %v519_v28 = vmul.f32 %v516_v25, %v486_v10  ;;  %v1375_v34 = vsel %vm499_vm4, %v1354_v17, %v498_v29 }
  0xb6   : > { %v1366_v30 = vmul.f32 0.34549415, %v517_v26  ;;  %v1368_v31 = vmul.f32 -0.34549415, %v518_v27  ;;  %v1370_v32 = vmul.f32 0.48860252, %v519_v28 }
  0xb7   : > { %v1372_v33 = vmul.f32 -0.34549415, %v517_v26 }
  0xb8   : > { %1012 = vst [vmem:[%s1378_s9 + $0x10] sm:$0xff] %v1366_v30  ;;  %v539_v36 = vmul.f32 %v1366_v30, %v1366_v30  ;;  %v540_v37 = vmul.f32 %v1368_v31, %v1368_v31  ;;  %v544_v38 = vmul.f32 %v1368_v31, %v1366_v30  ;;  %v552_v39 = vmul.f32 %v1370_v32, %v1366_v30 }
  0xb9   : > { %1013 = vst [vmem:[%s1378_s9 + $0x18] sm:$0xff] %v1368_v31  ;;  %v553_v40 = vmul.f32 0.0, %v1368_v31  ;;  %v557_v41 = vmul.f32 0.0, %v1366_v30  ;;  %v558_v42 = vmul.f32 %v1370_v32, %v1368_v31  ;;  %v568_v43 = vmul.f32 %v1372_v33, %v1366_v30 }
  0xba   : > { %1014 = vst [vmem:[%s1378_s9 + $0x20] sm:$0xff] %v1370_v32  ;;  %v541_v44 = vsub.f32 %v539_v36, %v540_v37  ;;  %v545_v45 = vadd.f32 %v544_v38, %v544_v38  ;;  %v572_v46 = vmul.f32 %v1372_v33, %v1368_v31  ;;  %v576_v47 = vmul.f32 %v1370_v32, %v1370_v32 }
  0xbb   : > { %1016 = vst [vmem:[%s1378_s9 + $0x30] sm:$0xff] %v1372_v33  ;;  %v554_v48 = vsub.f32 %v552_v39, %v553_v40  ;;  %v559_v49 = vadd.f32 %v558_v42, %v557_v41  ;;  %v569_v50 = vsub.f32 %v568_v43, %v540_v37  ;;  %v579_v51 = vmul.f32 0.0, %v1370_v32 }
  0xbc   : > { %1017 = vst [vmem:[%s1378_s9 + $0x38] sm:$0xff] %v1368_v31  ;;  %v542_v52 = vmul.f32 3.2360432, %v541_v44  ;;  %v546_v53 = vmul.f32 3.2360432, %v545_v45  ;;  %v573_v54 = vadd.f32 %v572_v46, %v544_v38  ;;  %v589_v55 = vmul.f32 %v1372_v33, %v1370_v32 }
  0xbd   : > { %v555_v56 = vmul.f32 2.288228, %v554_v48  ;;  %v560_v57 = vmul.f32 2.288228, %v559_v49  ;;  %v570_v58 = vmul.f32 1.321109, %v569_v50  ;;  %v580_v59 = vadd.f32 %v579_v51, %v579_v51 }
  0xbe   : > { %1018 = vst [vmem:[%s1378_s9 + $0x40] sm:$0xff] %v542_v52  ;;  %v574_v60 = vmul.f32 1.321109, %v573_v54  ;;  %v577_v61 = vmul.f32 2.642218, %v576_v47  ;;  %v590_v62 = vsub.f32 %v589_v55, %v553_v40  ;;  %v593_v63 = vmul.f32 0.0, %v1372_v33 }
  0xbf   : > { %1019 = vst [vmem:[%s1378_s9 + $0x48] sm:$0xff] %v546_v53  ;;  %v1414_v0 = vadd.f32 %v555_v56, %v555_v56  ;;  %v1416_v1 = vadd.f32 %v560_v57, %v560_v57  ;;  %v581_v2 = vmul.f32 2.642218, %v580_v59  ;;  %v603_v3 = vmul.f32 %v1372_v33, %v1372_v33 }
  0xc0   : > { %v578_v4 = vadd.f32 %v577_v61, %v570_v58  ;;  %v591_v5 = vmul.f32 2.288228, %v590_v62  ;;  %v594_v6 = vadd.f32 %v593_v63, %v558_v42  ;;  %v607_v7 = vadd.f32 %v572_v46, %v572_v46 }
  0xc1   : > { %1020 = vst [vmem:[%s1378_s9 + $0x50] sm:$0xff] %v1414_v0  ;;  %v582_v8 = vadd.f32 %v581_v2, %v574_v60  ;;  %v604_v9 = vsub.f32 %v603_v3, %v540_v37  ;;  %v614_v10 = vmul.f32 %v542_v52, %v1366_v30  ;;  %v615_v11 = vmul.f32 %v546_v53, %v1368_v31 }
  0xc2   : > { %1021 = vst [vmem:[%s1378_s9 + $0x58] sm:$0xff] %v1416_v1  ;;  %v1426_v12 = vadd.f32 %v578_v4, %v570_v58  ;;  %v595_v13 = vmul.f32 2.288228, %v594_v6  ;;  %v1428_v14 = vadd.f32 %v591_v5, %v591_v5  ;;  %v1430_v15 = vmul.f32 3.2360432, %v607_v7 }
  0xc3   : > { %v1432_v16 = vadd.f32 %v582_v8, %v574_v60  ;;  %v1434_v18 = vmul.f32 3.2360432, %v604_v9  ;;  %v616_v19 = vsub.f32 %v614_v10, %v615_v11  ;;  %v619_v20 = vmul.f32 %v542_v52, %v1368_v31 }
  0xc4   : > { %1022 = vst [vmem:[%s1378_s9 + $0x60] sm:$0xff] %v1426_v12  ;;  %v1439_v21 = vadd.f32 %v595_v13, %v595_v13  ;;  %v620_v22 = vmul.f32 %v546_v53, %v1366_v30  ;;  %v628_v23 = vmul.f32 %v542_v52, %v1370_v32  ;;  %v629_v24 = vmul.f32 0.0, %v546_v53 }
  0xc5   : > { %1023 = vst [vmem:[%s1378_s9 + $0x68] sm:$0xff] %v1432_v16  ;;  %v617_v25 = vmul.f32 3.1263146, %v616_v19  ;;  %v633_v26 = vmul.f32 0.0, %v542_v52  ;;  %v634_v27 = vmul.f32 %v546_v53, %v1370_v32  ;;  %v638_v28 = vmul.f32 %v1414_v0, %v1366_v30 }
  0xc6   : > { %1024 = vst [vmem:[%s1378_s9 + $0x70] sm:$0xff] %v1428_v14  ;;  %v621_v29 = vadd.f32 %v620_v22, %v619_v20  ;;  %v630_v36 = vsub.f32 %v628_v23, %v629_v24  ;;  %v639_v37 = vmul.f32 %v1416_v1, %v1368_v31  ;;  %v643_v38 = vmul.f32 %v1414_v0, %v1368_v31 }
  0xc7   : > { %1025 = vst [vmem:[%s1378_s9 + $0x78] sm:$0xff] %v1439_v21  ;;  %v635_v39 = vadd.f32 %v634_v27, %v633_v26  ;;  %v644_v40 = vmul.f32 %v1416_v1, %v1366_v30  ;;  %v652_v41 = vmul.f32 %v542_v52, %v1372_v33  ;;  %v656_v42 = vmul.f32 %v546_v53, %v1372_v33 }
  0xc8   : > { %1026 = vst [vmem:[%s1378_s9 + $0x80] sm:$0xff] %v1434_v18  ;;  %v622_v43 = vmul.f32 3.1263146, %v621_v29  ;;  %v631_v44 = vmul.f32 1.8049786, %v630_v36  ;;  %v640_v45 = vsub.f32 %v638_v28, %v639_v37  ;;  %v660_v46 = vmul.f32 %v1414_v0, %v1370_v32 }
  0xc9   : > { %1027 = vst [vmem:[%s1378_s9 + $0x88] sm:$0xff] %v1430_v15  ;;  %v636_v47 = vmul.f32 1.8049786, %v635_v39  ;;  %v645_v48 = vadd.f32 %v644_v40, %v643_v38  ;;  %v653_v49 = vsub.f32 %v652_v41, %v615_v11  ;;  %v657_v50 = vadd.f32 %v656_v42, %v619_v20 }
  0xca   : > { %1028 = vst [vmem:[%s1378_s9 + $0x90] sm:$0xff] %v617_v25  ;;  %v641_v51 = vmul.f32 2.5526252, %v640_v45  ;;  %v661_v52 = vmul.f32 0.0, %v1416_v1  ;;  %v665_v53 = vmul.f32 0.0, %v1414_v0  ;;  %v666_v54 = vmul.f32 %v1416_v1, %v1370_v32 }
  0xcb   : > { %1029 = vst [vmem:[%s1378_s9 + $0x98] sm:$0xff] %v622_v43  ;;  %v646_v55 = vmul.f32 2.5526252, %v645_v48  ;;  %v654_v56 = vmul.f32 0.807211, %v653_v49  ;;  %v670_v57 = vmul.f32 %v1426_v12, %v1366_v30  ;;  %v671_v58 = vmul.f32 %v1432_v16, %v1368_v31 }
  0xcc   : > { %v642_v59 = vadd.f32 %v641_v51, %v631_v44  ;;  %v658_v60 = vmul.f32 0.807211, %v657_v50  ;;  %v662_v61 = vsub.f32 %v660_v46, %v661_v52  ;;  %v667_v62 = vadd.f32 %v666_v54, %v665_v53 }
  0xcd   : > { %v647_v63 = vadd.f32 %v646_v55, %v636_v47  ;;  %v672_v2 = vsub.f32 %v670_v57, %v671_v58  ;;  %v675_v3 = vmul.f32 %v1426_v12, %v1368_v31  ;;  %v676_v4 = vmul.f32 %v1432_v16, %v1366_v30 }
  0xce   : > { %1030 = vst [vmem:[%s1378_s9 + $0xa0] sm:$0xff] %v642_v59  ;;  %v663_v5 = vmul.f32 2.2831376, %v662_v61  ;;  %v668_v6 = vmul.f32 2.2831376, %v667_v62  ;;  %v684_v7 = vmul.f32 %v1414_v0, %v1372_v33  ;;  %v688_v8 = vmul.f32 %v1416_v1, %v1372_v33 }
  0xcf   : > { %1031 = vst [vmem:[%s1378_s9 + $0xa8] sm:$0xff] %v647_v63  ;;  %v673_v9 = vmul.f32 1.9772551, %v672_v2  ;;  %v677_v10 = vadd.f32 %v676_v4, %v675_v3  ;;  %v692_v11 = vmul.f32 %v1426_v12, %v1370_v32  ;;  %v693_v13 = vmul.f32 0.0, %v1432_v16 }
  0xd0   : > { %v664_v19 = vadd.f32 %v663_v5, %v654_v56  ;;  %v669_v20 = vadd.f32 %v668_v6, %v658_v60  ;;  %v685_v22 = vsub.f32 %v684_v7, %v639_v37  ;;  %v689_v23 = vadd.f32 %v688_v8, %v643_v38 }
  0xd1   : > { %v678_v24 = vmul.f32 1.9772551, %v677_v10  ;;  %v694_v25 = vsub.f32 %v692_v11, %v693_v13  ;;  %v697_v0 = vmul.f32 0.0, %v1426_v12  ;;  %v698_v1 = vmul.f32 %v1432_v16, %v1370_v32 }
  0xd2   : > { %v674_v26 = vadd.f32 %v673_v9, %v664_v19  ;;  %v686_v27 = vmul.f32 1.3981304, %v685_v22  ;;  %v690_v28 = vmul.f32 1.3981304, %v689_v23  ;;  %v702_v29 = vmul.f32 %v1428_v14, %v1366_v30 }
  0xd3   : > { %v679_v36 = vadd.f32 %v678_v24, %v669_v20  ;;  %v695_v39 = vmul.f32 2.421633, %v694_v25  ;;  %v699_v40 = vadd.f32 %v698_v1, %v697_v0  ;;  %v703_v37 = vmul.f32 %v1439_v21, %v1368_v31 }
  0xd4   : > { %1032 = vst [vmem:[%s1378_s9 + $0xb0] sm:$0xff] %v674_v26  ;;  %v707_v38 = vmul.f32 %v1428_v14, %v1368_v31  ;;  %v708_v41 = vmul.f32 %v1439_v21, %v1366_v30  ;;  %v716_v42 = vmul.f32 %v1426_v12, %v1372_v33  ;;  %v720_v43 = vmul.f32 %v1432_v16, %v1372_v33 }
  0xd5   : > { %1033 = vst [vmem:[%s1378_s9 + $0xb8] sm:$0xff] %v679_v36  ;;  %v696_v44 = vadd.f32 %v695_v39, %v686_v27  ;;  %v700_v45 = vmul.f32 2.421633, %v699_v40  ;;  %v704_v46 = vsub.f32 %v702_v29, %v703_v37  ;;  %v724_v47 = vmul.f32 %v1428_v14, %v1370_v32 }
  0xd6   : > { %v709_v48 = vadd.f32 %v708_v41, %v707_v38  ;;  %v717_v49 = vsub.f32 %v716_v42, %v671_v58  ;;  %v721_v50 = vadd.f32 %v720_v43, %v675_v3  ;;  %v725_v51 = vmul.f32 0.0, %v1439_v21 }
  0xd7   : > { %v701_v52 = vadd.f32 %v700_v45, %v690_v28  ;;  %v705_v53 = vmul.f32 1.3981304, %v704_v46  ;;  %v729_v12 = vmul.f32 0.0, %v1428_v14  ;;  %v730_v16 = vmul.f32 %v1439_v21, %v1370_v32 }
  0xd8   : > { %v710_v54 = vmul.f32 1.3981304, %v709_v48  ;;  %v718_v55 = vmul.f32 1.9772551, %v717_v49  ;;  %v722_v56 = vmul.f32 1.9772551, %v721_v50  ;;  %v726_v57 = vsub.f32 %v724_v47, %v725_v51 }
  0xd9   : > { %v706_v59 = vadd.f32 %v705_v53, %v696_v44  ;;  %v731_v58 = vadd.f32 %v730_v16, %v729_v12  ;;  %v734_v60 = vmul.f32 %v1434_v18, %v1366_v30  ;;  %v735_v61 = vmul.f32 %v1430_v15, %v1368_v31 }
  0xda   : > { %v711_v62 = vadd.f32 %v710_v54, %v701_v52  ;;  %v727_v63 = vmul.f32 2.2831376, %v726_v57  ;;  %v739_v2 = vmul.f32 %v1434_v18, %v1368_v31  ;;  %v740_v3 = vmul.f32 %v1430_v15, %v1366_v30 }
  0xdb   : > { %1034 = vst [vmem:[%s1378_s9 + $0xc0] sm:$0xff] %v706_v59  ;;  %v732_v4 = vmul.f32 2.2831376, %v731_v58  ;;  %v736_v5 = vsub.f32 %v734_v60, %v735_v61  ;;  %v748_v6 = vmul.f32 %v1428_v14, %v1372_v33  ;;  %v752_v7 = vmul.f32 %v1439_v21, %v1372_v33 }
  0xdc   : > { %1035 = vst [vmem:[%s1378_s9 + $0xc8] sm:$0xff] %v711_v62  ;;  %v728_v8 = vadd.f32 %v727_v63, %v718_v55  ;;  %v741_v9 = vadd.f32 %v740_v3, %v739_v2  ;;  %v756_v10 = vmul.f32 %v1434_v18, %v1370_v32  ;;  %v757_v31 = vmul.f32 0.0, %v1430_v15 }
  0xdd   : > { %v733_v11 = vadd.f32 %v732_v4, %v722_v56  ;;  %v737_v30 = vmul.f32 0.807211, %v736_v5  ;;  %v749_v13 = vsub.f32 %v748_v6, %v703_v37  ;;  %v753_v19 = vadd.f32 %v752_v7, %v707_v38 }
  0xde   : > { %v742_v20 = vmul.f32 0.807211, %v741_v9  ;;  %v758_v14 = vsub.f32 %v756_v10, %v757_v31  ;;  %v761_v21 = vmul.f32 0.0, %v1434_v18  ;;  %v762_v22 = vmul.f32 %v1430_v15, %v1370_v32 }
  0xdf   : > { %v738_v23 = vadd.f32 %v737_v30, %v728_v8  ;;  %v750_v24 = vmul.f32 2.5526252, %v749_v13  ;;  %v754_v25 = vmul.f32 2.5526252, %v753_v19  ;;  %v770_v0 = vmul.f32 %v1434_v18, %v1372_v33 }
  0xe0   : > { %v743_v1 = vadd.f32 %v742_v20, %v733_v11  ;;  %v759_v26 = vmul.f32 1.8049786, %v758_v14  ;;  %v763_v27 = vadd.f32 %v762_v22, %v761_v21  ;;  %v774_v28 = vmul.f32 %v1430_v15, %v1372_v33 }
  0xe1   : > { %1036 = vst [vmem:[%s1378_s9 + $0xd0] sm:$0xff] %v738_v23  ;;  %v771_v32 = vsub.f32 %v770_v0, %v735_v61  ;;  %v503_v18 = vsel %vm501_vm5, %v502_v35, %v1375_v34  ;;  %v1235_v15 = vmov 0.2820948   ;;  %v1236_v34 = vmov 0.0  }
  0xe2   : > { %1037 = vst [vmem:[%s1378_s9 + $0xd8] sm:$0xff] %v743_v1  ;;  %v760_v29 = vadd.f32 %v759_v26, %v750_v24  ;;  %v764_v36 = vmul.f32 1.8049786, %v763_v27  ;;  %v775_v39 = vadd.f32 %v774_v28, %v739_v2 }
  0xe3   : > { %v772_v33 = vmul.f32 3.1263146, %v771_v32  ;;  %520 = vst [vmem:[%s1378_s9] sm:$0xff] %v1235_v15 }
  0xe4   : > { %v765_v40 = vadd.f32 %v764_v36, %v754_v25  ;;  %1038 = vst [vmem:[%s1378_s9 + $0xe0] sm:$0xff] %v760_v29  ;;  %v776_v17 = vmul.f32 3.1263146, %v775_v39 }
  0xe5   : > { %1040 = vst [vmem:[%s1378_s9 + $0xf0] sm:$0xff] %v772_v33 }
  0xe6   : > { %1039 = vst [vmem:[%s1378_s9 + $0xe8] sm:$0xff] %v765_v40 }
  0xe7   : > { %1041 = vst [vmem:[%s1378_s9 + $0xf8] sm:$0xff] %v776_v17 }
  0xe8   : > { %1011 = vst [vmem:[%s1378_s9 + $0x8] sm:$0xff] %v1236_v34 }
  0xe9   : > { %1015 = vst [vmem:[%s1378_s9 + $0x28] sm:$0xff] %v1236_v34 }
  0xea   : > { %1149 = shalt.err (!%p1146_p5)
}
  0xeb   : > { %s1237_s9 = smov 128   ;;  %s1238_s27 = smov 8   ;;  %504 = vst [vmem:[%s1562_s12] sm:$0xff] %v503_v18 }
  0xec   : > { %1050 = dma.vmem_to_hbm [thread:$0]  (%p1319_p4), %s1557_s23, 4096, %s1559_s30, %s783_s20, %s1237_s9, %s1237_s9, %s1238_s27  }
  0xed   : > { %s788_s8 = scalar_lea.sflag [#allocation5], %s1360_s3  ;;  %s1164_s10 = sshra.s32 %s1570_s18, 4  ;;  %s1165_s10 = int_to_ptr.hbm [resolvable:$true] %s1164_s10 }
  0xee   : > { %s1166_s28 = scalar_lea.hbm %s1165_s10, 8  ;;  %s1170_s16 = scalar_lea.hbm %s1630_s7, 16 }
  0xef   : > { %p1167_p6 = scmp.ne.s32.totalorder %s1165_s10, %s1166_s28  ;;  %p1171_p10 = scmp.lt.s32.totalorder %s1165_s10, %s1630_s7 }
  0xf0   : > { %p1172_p11 = scmp.lt.s32.totalorder %s1170_s16, %s1166_s28 }
  0xf1   : > { %p1168_p7 = pnand %p1167_p6, %p1319_p4 }
  0xf2   : > { %p1173_p12 = por %p1172_p11, %p1171_p10 }
  0xf3   : > { %p1169_p9 = pneg %p1168_p7 }
  0xf5   : > { %p1174_p13 = pnand %p1173_p12, %p1169_p9 }
  0xf7   : > { %1177 = shalt.err (!%p1174_p13)
}
  0xf8   : > { %1051 = dma.vmem_to_hbm [thread:$0]  (%p1319_p4), %s1568_s17, 128, %s1570_s18, %s788_s8  }
  0xf9 PF: > { %p1061_p0 = scmp.ge.s32.totalorder %s1232_s29, 2  ;;  %s835_s3 = sand.u32 1, %s1212_s24  }
  0xfa   : > { %s836_s23 = scalar_lea.sflag [#allocation3], %s835_s3 }
  0xfb   : > { %p1055_p1 = pnand %p1061_p0, %p1326_p8 }
  0xfd   : > { %p1056_p2 = pneg %p1055_p1 }
  0xff   : > { %1203 = dma.done.wait (%p1056_p2), %s836_s23, 4096  }
 0x100   : > { %1205 = vsyncadd (%p1056_p2), %s836_s23, 4294963200  ;;  %s846_s30 = scalar_lea.sflag [#allocation5], %s835_s3 }
 0x101   : > { %1207 = dma.done.wait (%p1056_p2), %s846_s30, 128  }
 0x102   : > { %1209 = vsyncadd (%p1056_p2), %s846_s30, 4294967168  ;;  %s24_s29 = sadd.s32 1, %s1232_s29   ;;  %s1640_s11 = sld [smem:[#allocation10_spill]] }
 0x103   : > { %p21_p3 = scmp.ge.s32.totalorder %s24_s29, 4   ;;  %s1641_s27 = sld [smem:[#allocation8_spill]] }
 0x104   : > { %s1642_s28 = sld [smem:[#allocation9_spill]]  ;;  %s1643_s24 = smov %s1216_s25 }
 0x105   : > { %s1644_s25 = smov %s1220_s26  ;;  %23 = sbr.rel (!%p21_p3) target bundleno = 8 (0x8), region = 142 }
 0x108   : > { %s1645_s26 = smov %s1640_s11 }
 0x10a   :  { %852 = vsyncpa [#allocation3], 1 }
 0x10b   :  { %854 = vsyncpa [#allocation3 + $0x1], 1 }
 0x10c   :  { %855 = vsyncpa [#allocation5], 1 }
 0x10d   :  { %857 = vsyncpa [#allocation5 + $0x1], 1 }

</bundles_post_ra>
